<compile_context>
chip_gen: v6e
topology: v6e:2x2x1
jax: 0.10.0
libtpu: 0.0.40
codegen_flags: <defaults>
</compile_context>

<pallas_src>
import math

import jax
import jax.numpy as jnp
from jax.experimental import pallas as pl
from jax.experimental.pallas import tpu as pltpu

WINDOW_SIZE = 11
WINDOW_SIGMA = 1.5
_HALF = WINDOW_SIZE // 2
_C1 = 0.01 ** 2
_C2 = 0.03 ** 2


def _gaussian_weights(size, sigma):
    g = [math.exp(-((i - size // 2) ** 2) / (2.0 * sigma * sigma)) for i in range(size)]
    s = sum(g)
    return [v / s for v in g]


_G = _gaussian_weights(WINDOW_SIZE, WINDOW_SIGMA)  # python floats -> kernel constants


def _c_ssim_kernel(p1_ref, p2_ref, idx_ref, sum_p_ref, sum_n_ref):
    """One (batch, H-tile) block.

    p1_ref / p2_ref / idx_ref : (Wp, TH) f32 -- channel-reduced pred / target and the
        float argmax-mask, zero-padded by 5 along the conv (sublane) axis, image rows
        (H) on the lane axis.
    sum_p_ref / sum_n_ref     : (1, TH) per-lane partial sums (over the W axis) of the
        SSIM map for the positive / negative branch of this block.
    """
    Wp, _ = p1_ref.shape
    W = Wp - 2 * _HALF

    p1 = p1_ref[...]
    p2 = p2_ref[...]
    idx = idx_ref[...]
    pos = 1.0 - idx

    def conv_w(x):
        # Symmetric 11-tap gaussian along the padded-W (sublane) axis.
        # G[k] == G[10-k]  ->  6 multiplies + 10 adds per conv instead of 11 + 10.
        # NOTE: if a bundle dump shows the shifted sublane slices saturating the vld /
        # XLU slots, switch to a once-loaded slab + pltpu.roll(x, -k, axis=0).
        acc = jnp.float32(_G[_HALF]) * x[_HALF:_HALF + W, :]
        for k in range(_HALF):
            j = WINDOW_SIZE - 1 - k
            acc = acc + jnp.float32(_G[k]) * (x[k:k + W, :] + x[j:j + W, :])
        return acc

    def ssim_row_sums(x, y):
        mu1 = conv_w(x)
        mu2 = conv_w(y)
        mu1_sq = mu1 * mu1
        mu2_sq = mu2 * mu2
        mu1_mu2 = mu1 * mu2
        sigma1_sq = conv_w(x * x) - mu1_sq
        sigma2_sq = conv_w(y * y) - mu2_sq
        sigma12 = conv_w(x * y) - mu1_mu2
        num = (2.0 * mu1_mu2 + _C1) * (2.0 * sigma12 + _C2)
        den = (mu1_sq + mu2_sq + _C1) * (sigma1_sq + sigma2_sq + _C2)
        # EUP approx reciprocal + one Newton step (relative err ~ eps^2 << 1e-5):
        # keeps the divide off the VALU slots without breaking the tolerance.
        r = pl.reciprocal(den, approx=True)
        r = r * (2.0 - den * r)
        ssim_map = num * r
        # Reduce only over the sublane (W) axis -> lane-dense (1, TH) partials.
        return jnp.sum(ssim_map, axis=0, keepdims=True)

    sum_p_ref[...] = ssim_row_sums(pos * p1, pos * p2)
    sum_n_ref[...] = ssim_row_sums(idx * p1, idx * p2)


# Generous upper bound on live (Wp, TH) f32 temporaries inside the kernel body.
_TEMP_SLABS = 26


def _block_bytes(wp, th):
    """Rough per-grid-step VMEM footprint: 3 double-buffered inputs + body temps."""
    slab = wp * th * 4
    return (3 * 2 + _TEMP_SLABS) * slab


def _pick_h_tile(h, wp, batch, target=512, budget=40 * 1024 * 1024):
    """H sits on the lane axis, so a tile must be a multiple of 128 or the full H.

    The tile is capped by `target` and by a VMEM budget chosen so inputs + temporaries
    fit comfortably under v7x's 64 MiB physical VMEM; when batch == 1 we also force
    >= 2 H-tiles so both v7x TensorCores get work.
    """
    if h % 128 != 0:
        # TODO(synk): for very large images whose H is not a multiple of 128, pad H to
        # a 128-multiple (with analytic compensation) instead of one full-extent block.
        return h
    divisors = [t for t in range(128, h + 1, 128) if h % t == 0]
    th = divisors[0]
    for t in divisors:
        if t <= target and _block_bytes(wp, t) <= budget:
            th = t
    if batch == 1 and th == h and len(divisors) > 1:
        th = divisors[-2]
    return th


def c_ssim_loss(pred, target, mask, loss_weight=1.0, balance_weight=0.2,
                ssim_loss_weight=1.0, h_tile=512):
    pred = pred.astype(jnp.float32)
    target = target.astype(jnp.float32)
    mask = mask.astype(jnp.float32)
    B, C, H, W = pred.shape
    half = _HALF
    Wp = W + 2 * half

    # Fused prep pass (wrapper / XLA): channel mean, argmax, conv-axis zero pad and the
    # transpose that puts image rows (H) on the lane axis.  Only these 3 single-channel
    # slabs are written to HBM and streamed into the kernel.
    p1 = jnp.mean(pred, axis=1)                          # (B, H, W)
    p2 = jnp.mean(target, axis=1)                        # (B, H, W)
    idx = jnp.argmax(mask, axis=1).astype(jnp.float32)   # (B, H, W)

    def prep(x):
        xp = jnp.pad(x, ((0, 0), (0, 0), (half, half)))  # zero-pad conv axis (W)
        return jnp.transpose(xp, (0, 2, 1))              # (B, Wp, H): H on lanes

    p1_t, p2_t, idx_t = prep(p1), prep(p2), prep(idx)

    TH = _pick_h_tile(H, Wp, B, target=h_tile)
    NH = H // TH
    grid = (B, NH)

    in_spec = pl.BlockSpec((None, Wp, TH), lambda b, h: (b, 0, h))
    out_spec = pl.BlockSpec((None, 1, TH), lambda b, h: (b, 0, h))
    out_shape = (jax.ShapeDtypeStruct((B, 1, H), jnp.float32),
                 jax.ShapeDtypeStruct((B, 1, H), jnp.float32))

    vmem_limit = int(min(max(2 * _block_bytes(Wp, TH), 16 * 1024 * 1024),
                         48 * 1024 * 1024))

    sum_p, sum_n = pl.pallas_call(
        _c_ssim_kernel,
        grid=grid,
        in_specs=[in_spec, in_spec, in_spec],
        out_specs=(out_spec, out_spec),
        out_shape=out_shape,
        compiler_params=pltpu.CompilerParams(
            dimension_semantics=("parallel", "parallel"),
            vmem_limit_bytes=vmem_limit,
        ),
    )(p1_t, p2_t, idx_t)

    # F.conv2d pads H by `half` too (kernel height is 1), so the PyTorch ssim_map has
    # 2*half extra rows per image where mu = sigma = 0 and the map is exactly 1.0.
    n_total = B * (H + 2 * half) * W
    pad_ones = jnp.float32(B * 2 * half * W)
    ssim_p = (jnp.sum(sum_p) + pad_ones) / n_total
    ssim_n = (jnp.sum(sum_n) + pad_ones) / n_total
    loss_p = ssim_loss_weight * (1.0 - ssim_p)   # SSIMLoss on positive branch
    loss_n = ssim_loss_weight * (1.0 - ssim_n)   # SSIMLoss on negative branch
    return loss_weight * (balance_weight * loss_p
                          - (1.0 - balance_weight) * loss_n)


def _ref_loss(pred, target, mask):
    """Pure-JAX reference reproducing the PyTorch code (incl. the 1x11 conv with
    padding=5 on both H and W)."""
    g = jnp.asarray(_G, jnp.float32)
    half = _HALF
    pred1 = jnp.mean(pred, axis=1, keepdims=True)
    pred2 = jnp.mean(target, axis=1, keepdims=True)
    m = jnp.argmax(mask, axis=1)[:, None, :, :].astype(jnp.float32)

    def conv(z):
        Bz, Cz, Hz, Wz = z.shape
        zp = jnp.pad(z, ((0, 0), (0, 0), (half, half), (half, half)))
        out = jnp.zeros((Bz, Cz, Hz + 2 * half, Wz), jnp.float32)
        for k in range(WINDOW_SIZE):
            out = out + g[k] * zp[:, :, :, k:k + Wz]
        return out

    def ssim_val(x, y):
        mu1 = conv(x)
        mu2 = conv(y)
        mu1_sq = mu1 * mu1
        mu2_sq = mu2 * mu2
        mu1_mu2 = mu1 * mu2
        s1 = conv(x * x) - mu1_sq
        s2 = conv(y * y) - mu2_sq
        s12 = conv(x * y) - mu1_mu2
        smap = ((2 * mu1_mu2 + _C1) * (2 * s12 + _C2)
                / ((mu1_sq + mu2_sq + _C1) * (s1 + s2 + _C2)))
        return jnp.mean(smap)

    lp = 1.0 - ssim_val((1.0 - m) * pred1, (1.0 - m) * pred2)
    ln = 1.0 - ssim_val(m * pred1, m * pred2)
    return 0.2 * lp - 0.8 * ln


if __name__ == "__main__":
    key = jax.random.PRNGKey(0)
    k1, k2, k3 = jax.random.split(key, 3)
    B, C, H, W = 2, 4, 16, 16
    M = 2  # mask channels (argmax over this axis)
    pred = jax.random.normal(k1, (B, C, H, W), jnp.float32)
    target = jax.random.normal(k2, (B, C, H, W), jnp.float32)
    mask = jax.random.normal(k3, (B, M, H, W), jnp.float32)

    loss = jax.jit(c_ssim_loss)(pred, target, mask)
    jax.block_until_ready(loss)

    ref = _ref_loss(pred, target, mask)
    assert jnp.allclose(loss, ref, rtol=1e-4, atol=1e-5), (float(loss), float(ref))
    print("KERNEL_OK")
</pallas_src>

<mosaic_0001>
module attributes {stable_mosaic.version = 11 : i64} {
  func.func @_c_ssim_kernel(%arg0: i32, %arg1: i32, %arg2: memref<1x26x16xf32, #tpu.memory_space<vmem>>, %arg3: memref<1x26x16xf32, #tpu.memory_space<vmem>>, %arg4: memref<1x26x16xf32, #tpu.memory_space<vmem>>, %arg5: memref<1x1x16xf32, #tpu.memory_space<vmem>>, %arg6: memref<1x1x16xf32, #tpu.memory_space<vmem>>) attributes {dimension_semantics = [#tpu.dimension_semantics<parallel>, #tpu.dimension_semantics<parallel>], iteration_bounds = array<i64: 2, 1>, scalar_prefetch = 0 : i64, scratch_operands = 0 : i64, tpu.core_type = #tpu.core_type<tc>, window_params = [{transform_indices = @transform_0, window_bounds = array<i64: 1, 26, 16>}, {transform_indices = @transform_1, window_bounds = array<i64: 1, 26, 16>}, {transform_indices = @transform_2, window_bounds = array<i64: 1, 26, 16>}, {transform_indices = @transform_3, window_bounds = array<i64: 1, 1, 16>}, {transform_indices = @transform_4, window_bounds = array<i64: 1, 1, 16>}]} {
    %c0 = arith.constant 0 : index
    %c0_0 = arith.constant 0 : index
    %c0_1 = arith.constant 0 : index
    %0 = vector.load %arg2[%c0, %c0_0, %c0_1] : memref<1x26x16xf32, #tpu.memory_space<vmem>>, vector<1x26x16xf32>
    %1 = vector.shape_cast %0 : vector<1x26x16xf32> to vector<26x16xf32>
    %c0_2 = arith.constant 0 : index
    %c0_3 = arith.constant 0 : index
    %c0_4 = arith.constant 0 : index
    %2 = vector.load %arg3[%c0_2, %c0_3, %c0_4] : memref<1x26x16xf32, #tpu.memory_space<vmem>>, vector<1x26x16xf32>
    %3 = vector.shape_cast %2 : vector<1x26x16xf32> to vector<26x16xf32>
    %c0_5 = arith.constant 0 : index
    %c0_6 = arith.constant 0 : index
    %c0_7 = arith.constant 0 : index
    %4 = vector.load %arg4[%c0_5, %c0_6, %c0_7] : memref<1x26x16xf32, #tpu.memory_space<vmem>>, vector<1x26x16xf32>
    %5 = vector.shape_cast %4 : vector<1x26x16xf32> to vector<26x16xf32>
    %cst = arith.constant 1.000000e+00 : f32
    %6 = vector.broadcast %cst : f32 to vector<26x16xf32>
    %7 = arith.subf %6, %5 : vector<26x16xf32>
    %8 = arith.mulf %7, %1 : vector<26x16xf32>
    %9 = arith.mulf %7, %3 : vector<26x16xf32>
    %10 = vector.extract_strided_slice %8 {offsets = [5, 0], sizes = [16, 16], strides = [1, 1]} : vector<26x16xf32> to vector<16x16xf32>
    %cst_8 = arith.constant 0.266011715 : f32
    %11 = vector.broadcast %cst_8 : f32 to vector<16x16xf32>
    %12 = arith.mulf %11, %10 : vector<16x16xf32>
    %13 = vector.extract_strided_slice %8 {offsets = [0, 0], sizes = [16, 16], strides = [1, 1]} : vector<26x16xf32> to vector<16x16xf32>
    %14 = vector.extract_strided_slice %8 {offsets = [10, 0], sizes = [16, 16], strides = [1, 1]} : vector<26x16xf32> to vector<16x16xf32>
    %15 = arith.addf %13, %14 : vector<16x16xf32>
    %cst_9 = arith.constant 0.00102838012 : f32
    %16 = vector.broadcast %cst_9 : f32 to vector<16x16xf32>
    %17 = arith.mulf %16, %15 : vector<16x16xf32>
    %18 = arith.addf %12, %17 : vector<16x16xf32>
    %19 = vector.extract_strided_slice %8 {offsets = [1, 0], sizes = [16, 16], strides = [1, 1]} : vector<26x16xf32> to vector<16x16xf32>
    %20 = vector.extract_strided_slice %8 {offsets = [9, 0], sizes = [16, 16], strides = [1, 1]} : vector<26x16xf32> to vector<16x16xf32>
    %21 = arith.addf %19, %20 : vector<16x16xf32>
    %cst_10 = arith.constant 0.00759875821 : f32
    %22 = vector.broadcast %cst_10 : f32 to vector<16x16xf32>
    %23 = arith.mulf %22, %21 : vector<16x16xf32>
    %24 = arith.addf %18, %23 : vector<16x16xf32>
    %25 = vector.extract_strided_slice %8 {offsets = [2, 0], sizes = [16, 16], strides = [1, 1]} : vector<26x16xf32> to vector<16x16xf32>
    %26 = vector.extract_strided_slice %8 {offsets = [8, 0], sizes = [16, 16], strides = [1, 1]} : vector<26x16xf32> to vector<16x16xf32>
    %27 = arith.addf %25, %26 : vector<16x16xf32>
    %cst_11 = arith.constant 0.0360007733 : f32
    %28 = vector.broadcast %cst_11 : f32 to vector<16x16xf32>
    %29 = arith.mulf %28, %27 : vector<16x16xf32>
    %30 = arith.addf %24, %29 : vector<16x16xf32>
    %31 = vector.extract_strided_slice %8 {offsets = [3, 0], sizes = [16, 16], strides = [1, 1]} : vector<26x16xf32> to vector<16x16xf32>
    %32 = vector.extract_strided_slice %8 {offsets = [7, 0], sizes = [16, 16], strides = [1, 1]} : vector<26x16xf32> to vector<16x16xf32>
    %33 = arith.addf %31, %32 : vector<16x16xf32>
    %cst_12 = arith.constant 0.109360687 : f32
    %34 = vector.broadcast %cst_12 : f32 to vector<16x16xf32>
    %35 = arith.mulf %34, %33 : vector<16x16xf32>
    %36 = arith.addf %30, %35 : vector<16x16xf32>
    %37 = vector.extract_strided_slice %8 {offsets = [4, 0], sizes = [16, 16], strides = [1, 1]} : vector<26x16xf32> to vector<16x16xf32>
    %38 = vector.extract_strided_slice %8 {offsets = [6, 0], sizes = [16, 16], strides = [1, 1]} : vector<26x16xf32> to vector<16x16xf32>
    %39 = arith.addf %37, %38 : vector<16x16xf32>
    %cst_13 = arith.constant 0.213005543 : f32
    %40 = vector.broadcast %cst_13 : f32 to vector<16x16xf32>
    %41 = arith.mulf %40, %39 : vector<16x16xf32>
    %42 = arith.addf %36, %41 : vector<16x16xf32>
    %43 = vector.extract_strided_slice %9 {offsets = [5, 0], sizes = [16, 16], strides = [1, 1]} : vector<26x16xf32> to vector<16x16xf32>
    %cst_14 = arith.constant 0.266011715 : f32
    %44 = vector.broadcast %cst_14 : f32 to vector<16x16xf32>
    %45 = arith.mulf %44, %43 : vector<16x16xf32>
    %46 = vector.extract_strided_slice %9 {offsets = [0, 0], sizes = [16, 16], strides = [1, 1]} : vector<26x16xf32> to vector<16x16xf32>
    %47 = vector.extract_strided_slice %9 {offsets = [10, 0], sizes = [16, 16], strides = [1, 1]} : vector<26x16xf32> to vector<16x16xf32>
    %48 = arith.addf %46, %47 : vector<16x16xf32>
    %cst_15 = arith.constant 0.00102838012 : f32
    %49 = vector.broadcast %cst_15 : f32 to vector<16x16xf32>
    %50 = arith.mulf %49, %48 : vector<16x16xf32>
    %51 = arith.addf %45, %50 : vector<16x16xf32>
    %52 = vector.extract_strided_slice %9 {offsets = [1, 0], sizes = [16, 16], strides = [1, 1]} : vector<26x16xf32> to vector<16x16xf32>
    %53 = vector.extract_strided_slice %9 {offsets = [9, 0], sizes = [16, 16], strides = [1, 1]} : vector<26x16xf32> to vector<16x16xf32>
    %54 = arith.addf %52, %53 : vector<16x16xf32>
    %cst_16 = arith.constant 0.00759875821 : f32
    %55 = vector.broadcast %cst_16 : f32 to vector<16x16xf32>
    %56 = arith.mulf %55, %54 : vector<16x16xf32>
    %57 = arith.addf %51, %56 : vector<16x16xf32>
    %58 = vector.extract_strided_slice %9 {offsets = [2, 0], sizes = [16, 16], strides = [1, 1]} : vector<26x16xf32> to vector<16x16xf32>
    %59 = vector.extract_strided_slice %9 {offsets = [8, 0], sizes = [16, 16], strides = [1, 1]} : vector<26x16xf32> to vector<16x16xf32>
    %60 = arith.addf %58, %59 : vector<16x16xf32>
    %cst_17 = arith.constant 0.0360007733 : f32
    %61 = vector.broadcast %cst_17 : f32 to vector<16x16xf32>
    %62 = arith.mulf %61, %60 : vector<16x16xf32>
    %63 = arith.addf %57, %62 : vector<16x16xf32>
    %64 = vector.extract_strided_slice %9 {offsets = [3, 0], sizes = [16, 16], strides = [1, 1]} : vector<26x16xf32> to vector<16x16xf32>
    %65 = vector.extract_strided_slice %9 {offsets = [7, 0], sizes = [16, 16], strides = [1, 1]} : vector<26x16xf32> to vector<16x16xf32>
    %66 = arith.addf %64, %65 : vector<16x16xf32>
    %cst_18 = arith.constant 0.109360687 : f32
    %67 = vector.broadcast %cst_18 : f32 to vector<16x16xf32>
    %68 = arith.mulf %67, %66 : vector<16x16xf32>
    %69 = arith.addf %63, %68 : vector<16x16xf32>
    %70 = vector.extract_strided_slice %9 {offsets = [4, 0], sizes = [16, 16], strides = [1, 1]} : vector<26x16xf32> to vector<16x16xf32>
    %71 = vector.extract_strided_slice %9 {offsets = [6, 0], sizes = [16, 16], strides = [1, 1]} : vector<26x16xf32> to vector<16x16xf32>
    %72 = arith.addf %70, %71 : vector<16x16xf32>
    %cst_19 = arith.constant 0.213005543 : f32
    %73 = vector.broadcast %cst_19 : f32 to vector<16x16xf32>
    %74 = arith.mulf %73, %72 : vector<16x16xf32>
    %75 = arith.addf %69, %74 : vector<16x16xf32>
    %76 = arith.mulf %42, %42 : vector<16x16xf32>
    %77 = arith.mulf %75, %75 : vector<16x16xf32>
    %78 = arith.mulf %42, %75 : vector<16x16xf32>
    %79 = arith.mulf %8, %8 : vector<26x16xf32>
    %80 = vector.extract_strided_slice %79 {offsets = [5, 0], sizes = [16, 16], strides = [1, 1]} : vector<26x16xf32> to vector<16x16xf32>
    %cst_20 = arith.constant 0.266011715 : f32
    %81 = vector.broadcast %cst_20 : f32 to vector<16x16xf32>
    %82 = arith.mulf %81, %80 : vector<16x16xf32>
    %83 = vector.extract_strided_slice %79 {offsets = [0, 0], sizes = [16, 16], strides = [1, 1]} : vector<26x16xf32> to vector<16x16xf32>
    %84 = vector.extract_strided_slice %79 {offsets = [10, 0], sizes = [16, 16], strides = [1, 1]} : vector<26x16xf32> to vector<16x16xf32>
    %85 = arith.addf %83, %84 : vector<16x16xf32>
    %cst_21 = arith.constant 0.00102838012 : f32
    %86 = vector.broadcast %cst_21 : f32 to vector<16x16xf32>
    %87 = arith.mulf %86, %85 : vector<16x16xf32>
    %88 = arith.addf %82, %87 : vector<16x16xf32>
    %89 = vector.extract_strided_slice %79 {offsets = [1, 0], sizes = [16, 16], strides = [1, 1]} : vector<26x16xf32> to vector<16x16xf32>
    %90 = vector.extract_strided_slice %79 {offsets = [9, 0], sizes = [16, 16], strides = [1, 1]} : vector<26x16xf32> to vector<16x16xf32>
    %91 = arith.addf %89, %90 : vector<16x16xf32>
    %cst_22 = arith.constant 0.00759875821 : f32
    %92 = vector.broadcast %cst_22 : f32 to vector<16x16xf32>
    %93 = arith.mulf %92, %91 : vector<16x16xf32>
    %94 = arith.addf %88, %93 : vector<16x16xf32>
    %95 = vector.extract_strided_slice %79 {offsets = [2, 0], sizes = [16, 16], strides = [1, 1]} : vector<26x16xf32> to vector<16x16xf32>
    %96 = vector.extract_strided_slice %79 {offsets = [8, 0], sizes = [16, 16], strides = [1, 1]} : vector<26x16xf32> to vector<16x16xf32>
    %97 = arith.addf %95, %96 : vector<16x16xf32>
    %cst_23 = arith.constant 0.0360007733 : f32
    %98 = vector.broadcast %cst_23 : f32 to vector<16x16xf32>
    %99 = arith.mulf %98, %97 : vector<16x16xf32>
    %100 = arith.addf %94, %99 : vector<16x16xf32>
    %101 = vector.extract_strided_slice %79 {offsets = [3, 0], sizes = [16, 16], strides = [1, 1]} : vector<26x16xf32> to vector<16x16xf32>
    %102 = vector.extract_strided_slice %79 {offsets = [7, 0], sizes = [16, 16], strides = [1, 1]} : vector<26x16xf32> to vector<16x16xf32>
    %103 = arith.addf %101, %102 : vector<16x16xf32>
    %cst_24 = arith.constant 0.109360687 : f32
    %104 = vector.broadcast %cst_24 : f32 to vector<16x16xf32>
    %105 = arith.mulf %104, %103 : vector<16x16xf32>
    %106 = arith.addf %100, %105 : vector<16x16xf32>
    %107 = vector.extract_strided_slice %79 {offsets = [4, 0], sizes = [16, 16], strides = [1, 1]} : vector<26x16xf32> to vector<16x16xf32>
    %108 = vector.extract_strided_slice %79 {offsets = [6, 0], sizes = [16, 16], strides = [1, 1]} : vector<26x16xf32> to vector<16x16xf32>
    %109 = arith.addf %107, %108 : vector<16x16xf32>
    %cst_25 = arith.constant 0.213005543 : f32
    %110 = vector.broadcast %cst_25 : f32 to vector<16x16xf32>
    %111 = arith.mulf %110, %109 : vector<16x16xf32>
    %112 = arith.addf %106, %111 : vector<16x16xf32>
    %113 = arith.subf %112, %76 : vector<16x16xf32>
    %114 = arith.mulf %9, %9 : vector<26x16xf32>
    %115 = vector.extract_strided_slice %114 {offsets = [5, 0], sizes = [16, 16], strides = [1, 1]} : vector<26x16xf32> to vector<16x16xf32>
    %cst_26 = arith.constant 0.266011715 : f32
    %116 = vector.broadcast %cst_26 : f32 to vector<16x16xf32>
    %117 = arith.mulf %116, %115 : vector<16x16xf32>
    %118 = vector.extract_strided_slice %114 {offsets = [0, 0], sizes = [16, 16], strides = [1, 1]} : vector<26x16xf32> to vector<16x16xf32>
    %119 = vector.extract_strided_slice %114 {offsets = [10, 0], sizes = [16, 16], strides = [1, 1]} : vector<26x16xf32> to vector<16x16xf32>
    %120 = arith.addf %118, %119 : vector<16x16xf32>
    %cst_27 = arith.constant 0.00102838012 : f32
    %121 = vector.broadcast %cst_27 : f32 to vector<16x16xf32>
    %122 = arith.mulf %121, %120 : vector<16x16xf32>
    %123 = arith.addf %117, %122 : vector<16x16xf32>
    %124 = vector.extract_strided_slice %114 {offsets = [1, 0], sizes = [16, 16], strides = [1, 1]} : vector<26x16xf32> to vector<16x16xf32>
    %125 = vector.extract_strided_slice %114 {offsets = [9, 0], sizes = [16, 16], strides = [1, 1]} : vector<26x16xf32> to vector<16x16xf32>
    %126 = arith.addf %124, %125 : vector<16x16xf32>
    %cst_28 = arith.constant 0.00759875821 : f32
    %127 = vector.broadcast %cst_28 : f32 to vector<16x16xf32>
    %128 = arith.mulf %127, %126 : vector<16x16xf32>
    %129 = arith.addf %123, %128 : vector<16x16xf32>
    %130 = vector.extract_strided_slice %114 {offsets = [2, 0], sizes = [16, 16], strides = [1, 1]} : vector<26x16xf32> to vector<16x16xf32>
    %131 = vector.extract_strided_slice %114 {offsets = [8, 0], sizes = [16, 16], strides = [1, 1]} : vector<26x16xf32> to vector<16x16xf32>
    %132 = arith.addf %130, %131 : vector<16x16xf32>
    %cst_29 = arith.constant 0.0360007733 : f32
    %133 = vector.broadcast %cst_29 : f32 to vector<16x16xf32>
    %134 = arith.mulf %133, %132 : vector<16x16xf32>
    %135 = arith.addf %129, %134 : vector<16x16xf32>
    %136 = vector.extract_strided_slice %114 {offsets = [3, 0], sizes = [16, 16], strides = [1, 1]} : vector<26x16xf32> to vector<16x16xf32>
    %137 = vector.extract_strided_slice %114 {offsets = [7, 0], sizes = [16, 16], strides = [1, 1]} : vector<26x16xf32> to vector<16x16xf32>
    %138 = arith.addf %136, %137 : vector<16x16xf32>
    %cst_30 = arith.constant 0.109360687 : f32
    %139 = vector.broadcast %cst_30 : f32 to vector<16x16xf32>
    %140 = arith.mulf %139, %138 : vector<16x16xf32>
    %141 = arith.addf %135, %140 : vector<16x16xf32>
    %142 = vector.extract_strided_slice %114 {offsets = [4, 0], sizes = [16, 16], strides = [1, 1]} : vector<26x16xf32> to vector<16x16xf32>
    %143 = vector.extract_strided_slice %114 {offsets = [6, 0], sizes = [16, 16], strides = [1, 1]} : vector<26x16xf32> to vector<16x16xf32>
    %144 = arith.addf %142, %143 : vector<16x16xf32>
    %cst_31 = arith.constant 0.213005543 : f32
    %145 = vector.broadcast %cst_31 : f32 to vector<16x16xf32>
    %146 = arith.mulf %145, %144 : vector<16x16xf32>
    %147 = arith.addf %141, %146 : vector<16x16xf32>
    %148 = arith.subf %147, %77 : vector<16x16xf32>
    %149 = arith.mulf %8, %9 : vector<26x16xf32>
    %150 = vector.extract_strided_slice %149 {offsets = [5, 0], sizes = [16, 16], strides = [1, 1]} : vector<26x16xf32> to vector<16x16xf32>
    %cst_32 = arith.constant 0.266011715 : f32
    %151 = vector.broadcast %cst_32 : f32 to vector<16x16xf32>
    %152 = arith.mulf %151, %150 : vector<16x16xf32>
    %153 = vector.extract_strided_slice %149 {offsets = [0, 0], sizes = [16, 16], strides = [1, 1]} : vector<26x16xf32> to vector<16x16xf32>
    %154 = vector.extract_strided_slice %149 {offsets = [10, 0], sizes = [16, 16], strides = [1, 1]} : vector<26x16xf32> to vector<16x16xf32>
    %155 = arith.addf %153, %154 : vector<16x16xf32>
    %cst_33 = arith.constant 0.00102838012 : f32
    %156 = vector.broadcast %cst_33 : f32 to vector<16x16xf32>
    %157 = arith.mulf %156, %155 : vector<16x16xf32>
    %158 = arith.addf %152, %157 : vector<16x16xf32>
    %159 = vector.extract_strided_slice %149 {offsets = [1, 0], sizes = [16, 16], strides = [1, 1]} : vector<26x16xf32> to vector<16x16xf32>
    %160 = vector.extract_strided_slice %149 {offsets = [9, 0], sizes = [16, 16], strides = [1, 1]} : vector<26x16xf32> to vector<16x16xf32>
    %161 = arith.addf %159, %160 : vector<16x16xf32>
    %cst_34 = arith.constant 0.00759875821 : f32
    %162 = vector.broadcast %cst_34 : f32 to vector<16x16xf32>
    %163 = arith.mulf %162, %161 : vector<16x16xf32>
    %164 = arith.addf %158, %163 : vector<16x16xf32>
    %165 = vector.extract_strided_slice %149 {offsets = [2, 0], sizes = [16, 16], strides = [1, 1]} : vector<26x16xf32> to vector<16x16xf32>
    %166 = vector.extract_strided_slice %149 {offsets = [8, 0], sizes = [16, 16], strides = [1, 1]} : vector<26x16xf32> to vector<16x16xf32>
    %167 = arith.addf %165, %166 : vector<16x16xf32>
    %cst_35 = arith.constant 0.0360007733 : f32
    %168 = vector.broadcast %cst_35 : f32 to vector<16x16xf32>
    %169 = arith.mulf %168, %167 : vector<16x16xf32>
    %170 = arith.addf %164, %169 : vector<16x16xf32>
    %171 = vector.extract_strided_slice %149 {offsets = [3, 0], sizes = [16, 16], strides = [1, 1]} : vector<26x16xf32> to vector<16x16xf32>
    %172 = vector.extract_strided_slice %149 {offsets = [7, 0], sizes = [16, 16], strides = [1, 1]} : vector<26x16xf32> to vector<16x16xf32>
    %173 = arith.addf %171, %172 : vector<16x16xf32>
    %cst_36 = arith.constant 0.109360687 : f32
    %174 = vector.broadcast %cst_36 : f32 to vector<16x16xf32>
    %175 = arith.mulf %174, %173 : vector<16x16xf32>
    %176 = arith.addf %170, %175 : vector<16x16xf32>
    %177 = vector.extract_strided_slice %149 {offsets = [4, 0], sizes = [16, 16], strides = [1, 1]} : vector<26x16xf32> to vector<16x16xf32>
    %178 = vector.extract_strided_slice %149 {offsets = [6, 0], sizes = [16, 16], strides = [1, 1]} : vector<26x16xf32> to vector<16x16xf32>
    %179 = arith.addf %177, %178 : vector<16x16xf32>
    %cst_37 = arith.constant 0.213005543 : f32
    %180 = vector.broadcast %cst_37 : f32 to vector<16x16xf32>
    %181 = arith.mulf %180, %179 : vector<16x16xf32>
    %182 = arith.addf %176, %181 : vector<16x16xf32>
    %183 = arith.subf %182, %78 : vector<16x16xf32>
    %cst_38 = arith.constant 2.000000e+00 : f32
    %184 = vector.broadcast %cst_38 : f32 to vector<16x16xf32>
    %185 = arith.mulf %184, %78 : vector<16x16xf32>
    %cst_39 = arith.constant 9.99999974E-5 : f32
    %186 = vector.broadcast %cst_39 : f32 to vector<16x16xf32>
    %187 = arith.addf %185, %186 : vector<16x16xf32>
    %cst_40 = arith.constant 2.000000e+00 : f32
    %188 = vector.broadcast %cst_40 : f32 to vector<16x16xf32>
    %189 = arith.mulf %188, %183 : vector<16x16xf32>
    %cst_41 = arith.constant 8.99999984E-4 : f32
    %190 = vector.broadcast %cst_41 : f32 to vector<16x16xf32>
    %191 = arith.addf %189, %190 : vector<16x16xf32>
    %192 = arith.mulf %187, %191 : vector<16x16xf32>
    %193 = arith.addf %76, %77 : vector<16x16xf32>
    %cst_42 = arith.constant 9.99999974E-5 : f32
    %194 = vector.broadcast %cst_42 : f32 to vector<16x16xf32>
    %195 = arith.addf %193, %194 : vector<16x16xf32>
    %196 = arith.addf %113, %148 : vector<16x16xf32>
    %cst_43 = arith.constant 8.99999984E-4 : f32
    %197 = vector.broadcast %cst_43 : f32 to vector<16x16xf32>
    %198 = arith.addf %196, %197 : vector<16x16xf32>
    %199 = arith.mulf %195, %198 : vector<16x16xf32>
    %200 = tpu.reciprocal %199 {approx = true} : vector<16x16xf32> -> vector<16x16xf32>
    %201 = arith.mulf %199, %200 : vector<16x16xf32>
    %cst_44 = arith.constant 2.000000e+00 : f32
    %202 = vector.broadcast %cst_44 : f32 to vector<16x16xf32>
    %203 = arith.subf %202, %201 : vector<16x16xf32>
    %204 = arith.mulf %200, %203 : vector<16x16xf32>
    %205 = arith.mulf %192, %204 : vector<16x16xf32>
    %cst_45 = arith.constant dense<0.000000e+00> : vector<16xf32>
    %206 = vector.multi_reduction <add>, %205, %cst_45 [0] : vector<16x16xf32> to vector<16xf32>
    %207 = vector.shape_cast %206 : vector<16xf32> to vector<1x16xf32>
    %c0_46 = arith.constant 0 : index
    %c0_47 = arith.constant 0 : index
    %c0_48 = arith.constant 0 : index
    %208 = vector.load %arg5[%c0_46, %c0_47, %c0_48] : memref<1x1x16xf32, #tpu.memory_space<vmem>>, vector<1x1x16xf32>
    %209 = vector.shape_cast %208 : vector<1x1x16xf32> to vector<1x16xf32>
    %210 = vector.shape_cast %207 : vector<1x16xf32> to vector<1x1x16xf32>
    tpu.vector_store %arg5[%c0_46, %c0_47, %c0_48], %210 {strides = array<i32>} : memref<1x1x16xf32, #tpu.memory_space<vmem>>, vector<1x1x16xf32>,
    %211 = arith.mulf %5, %1 : vector<26x16xf32>
    %212 = arith.mulf %5, %3 : vector<26x16xf32>
    %213 = vector.extract_strided_slice %211 {offsets = [5, 0], sizes = [16, 16], strides = [1, 1]} : vector<26x16xf32> to vector<16x16xf32>
    %cst_49 = arith.constant 0.266011715 : f32
    %214 = vector.broadcast %cst_49 : f32 to vector<16x16xf32>
    %215 = arith.mulf %214, %213 : vector<16x16xf32>
    %216 = vector.extract_strided_slice %211 {offsets = [0, 0], sizes = [16, 16], strides = [1, 1]} : vector<26x16xf32> to vector<16x16xf32>
    %217 = vector.extract_strided_slice %211 {offsets = [10, 0], sizes = [16, 16], strides = [1, 1]} : vector<26x16xf32> to vector<16x16xf32>
    %218 = arith.addf %216, %217 : vector<16x16xf32>
    %cst_50 = arith.constant 0.00102838012 : f32
    %219 = vector.broadcast %cst_50 : f32 to vector<16x16xf32>
    %220 = arith.mulf %219, %218 : vector<16x16xf32>
    %221 = arith.addf %215, %220 : vector<16x16xf32>
    %222 = vector.extract_strided_slice %211 {offsets = [1, 0], sizes = [16, 16], strides = [1, 1]} : vector<26x16xf32> to vector<16x16xf32>
    %223 = vector.extract_strided_slice %211 {offsets = [9, 0], sizes = [16, 16], strides = [1, 1]} : vector<26x16xf32> to vector<16x16xf32>
    %224 = arith.addf %222, %223 : vector<16x16xf32>
    %cst_51 = arith.constant 0.00759875821 : f32
    %225 = vector.broadcast %cst_51 : f32 to vector<16x16xf32>
    %226 = arith.mulf %225, %224 : vector<16x16xf32>
    %227 = arith.addf %221, %226 : vector<16x16xf32>
    %228 = vector.extract_strided_slice %211 {offsets = [2, 0], sizes = [16, 16], strides = [1, 1]} : vector<26x16xf32> to vector<16x16xf32>
    %229 = vector.extract_strided_slice %211 {offsets = [8, 0], sizes = [16, 16], strides = [1, 1]} : vector<26x16xf32> to vector<16x16xf32>
    %230 = arith.addf %228, %229 : vector<16x16xf32>
    %cst_52 = arith.constant 0.0360007733 : f32
    %231 = vector.broadcast %cst_52 : f32 to vector<16x16xf32>
    %232 = arith.mulf %231, %230 : vector<16x16xf32>
    %233 = arith.addf %227, %232 : vector<16x16xf32>
    %234 = vector.extract_strided_slice %211 {offsets = [3, 0], sizes = [16, 16], strides = [1, 1]} : vector<26x16xf32> to vector<16x16xf32>
    %235 = vector.extract_strided_slice %211 {offsets = [7, 0], sizes = [16, 16], strides = [1, 1]} : vector<26x16xf32> to vector<16x16xf32>
    %236 = arith.addf %234, %235 : vector<16x16xf32>
    %cst_53 = arith.constant 0.109360687 : f32
    %237 = vector.broadcast %cst_53 : f32 to vector<16x16xf32>
    %238 = arith.mulf %237, %236 : vector<16x16xf32>
    %239 = arith.addf %233, %238 : vector<16x16xf32>
    %240 = vector.extract_strided_slice %211 {offsets = [4, 0], sizes = [16, 16], strides = [1, 1]} : vector<26x16xf32> to vector<16x16xf32>
    %241 = vector.extract_strided_slice %211 {offsets = [6, 0], sizes = [16, 16], strides = [1, 1]} : vector<26x16xf32> to vector<16x16xf32>
    %242 = arith.addf %240, %241 : vector<16x16xf32>
    %cst_54 = arith.constant 0.213005543 : f32
    %243 = vector.broadcast %cst_54 : f32 to vector<16x16xf32>
    %244 = arith.mulf %243, %242 : vector<16x16xf32>
    %245 = arith.addf %239, %244 : vector<16x16xf32>
    %246 = vector.extract_strided_slice %212 {offsets = [5, 0], sizes = [16, 16], strides = [1, 1]} : vector<26x16xf32> to vector<16x16xf32>
    %cst_55 = arith.constant 0.266011715 : f32
    %247 = vector.broadcast %cst_55 : f32 to vector<16x16xf32>
    %248 = arith.mulf %247, %246 : vector<16x16xf32>
    %249 = vector.extract_strided_slice %212 {offsets = [0, 0], sizes = [16, 16], strides = [1, 1]} : vector<26x16xf32> to vector<16x16xf32>
    %250 = vector.extract_strided_slice %212 {offsets = [10, 0], sizes = [16, 16], strides = [1, 1]} : vector<26x16xf32> to vector<16x16xf32>
    %251 = arith.addf %249, %250 : vector<16x16xf32>
    %cst_56 = arith.constant 0.00102838012 : f32
    %252 = vector.broadcast %cst_56 : f32 to vector<16x16xf32>
    %253 = arith.mulf %252, %251 : vector<16x16xf32>
    %254 = arith.addf %248, %253 : vector<16x16xf32>
    %255 = vector.extract_strided_slice %212 {offsets = [1, 0], sizes = [16, 16], strides = [1, 1]} : vector<26x16xf32> to vector<16x16xf32>
    %256 = vector.extract_strided_slice %212 {offsets = [9, 0], sizes = [16, 16], strides = [1, 1]} : vector<26x16xf32> to vector<16x16xf32>
    %257 = arith.addf %255, %256 : vector<16x16xf32>
    %cst_57 = arith.constant 0.00759875821 : f32
    %258 = vector.broadcast %cst_57 : f32 to vector<16x16xf32>
    %259 = arith.mulf %258, %257 : vector<16x16xf32>
    %260 = arith.addf %254, %259 : vector<16x16xf32>
    %261 = vector.extract_strided_slice %212 {offsets = [2, 0], sizes = [16, 16], strides = [1, 1]} : vector<26x16xf32> to vector<16x16xf32>
    %262 = vector.extract_strided_slice %212 {offsets = [8, 0], sizes = [16, 16], strides = [1, 1]} : vector<26x16xf32> to vector<16x16xf32>
    %263 = arith.addf %261, %262 : vector<16x16xf32>
    %cst_58 = arith.constant 0.0360007733 : f32
    %264 = vector.broadcast %cst_58 : f32 to vector<16x16xf32>
    %265 = arith.mulf %264, %263 : vector<16x16xf32>
    %266 = arith.addf %260, %265 : vector<16x16xf32>
    %267 = vector.extract_strided_slice %212 {offsets = [3, 0], sizes = [16, 16], strides = [1, 1]} : vector<26x16xf32> to vector<16x16xf32>
    %268 = vector.extract_strided_slice %212 {offsets = [7, 0], sizes = [16, 16], strides = [1, 1]} : vector<26x16xf32> to vector<16x16xf32>
    %269 = arith.addf %267, %268 : vector<16x16xf32>
    %cst_59 = arith.constant 0.109360687 : f32
    %270 = vector.broadcast %cst_59 : f32 to vector<16x16xf32>
    %271 = arith.mulf %270, %269 : vector<16x16xf32>
    %272 = arith.addf %266, %271 : vector<16x16xf32>
    %273 = vector.extract_strided_slice %212 {offsets = [4, 0], sizes = [16, 16], strides = [1, 1]} : vector<26x16xf32> to vector<16x16xf32>
    %274 = vector.extract_strided_slice %212 {offsets = [6, 0], sizes = [16, 16], strides = [1, 1]} : vector<26x16xf32> to vector<16x16xf32>
    %275 = arith.addf %273, %274 : vector<16x16xf32>
    %cst_60 = arith.constant 0.213005543 : f32
    %276 = vector.broadcast %cst_60 : f32 to vector<16x16xf32>
    %277 = arith.mulf %276, %275 : vector<16x16xf32>
    %278 = arith.addf %272, %277 : vector<16x16xf32>
    %279 = arith.mulf %245, %245 : vector<16x16xf32>
    %280 = arith.mulf %278, %278 : vector<16x16xf32>
    %281 = arith.mulf %245, %278 : vector<16x16xf32>
    %282 = arith.mulf %211, %211 : vector<26x16xf32>
    %283 = vector.extract_strided_slice %282 {offsets = [5, 0], sizes = [16, 16], strides = [1, 1]} : vector<26x16xf32> to vector<16x16xf32>
    %cst_61 = arith.constant 0.266011715 : f32
    %284 = vector.broadcast %cst_61 : f32 to vector<16x16xf32>
    %285 = arith.mulf %284, %283 : vector<16x16xf32>
    %286 = vector.extract_strided_slice %282 {offsets = [0, 0], sizes = [16, 16], strides = [1, 1]} : vector<26x16xf32> to vector<16x16xf32>
    %287 = vector.extract_strided_slice %282 {offsets = [10, 0], sizes = [16, 16], strides = [1, 1]} : vector<26x16xf32> to vector<16x16xf32>
    %288 = arith.addf %286, %287 : vector<16x16xf32>
    %cst_62 = arith.constant 0.00102838012 : f32
    %289 = vector.broadcast %cst_62 : f32 to vector<16x16xf32>
    %290 = arith.mulf %289, %288 : vector<16x16xf32>
    %291 = arith.addf %285, %290 : vector<16x16xf32>
    %292 = vector.extract_strided_slice %282 {offsets = [1, 0], sizes = [16, 16], strides = [1, 1]} : vector<26x16xf32> to vector<16x16xf32>
    %293 = vector.extract_strided_slice %282 {offsets = [9, 0], sizes = [16, 16], strides = [1, 1]} : vector<26x16xf32> to vector<16x16xf32>
    %294 = arith.addf %292, %293 : vector<16x16xf32>
    %cst_63 = arith.constant 0.00759875821 : f32
    %295 = vector.broadcast %cst_63 : f32 to vector<16x16xf32>
    %296 = arith.mulf %295, %294 : vector<16x16xf32>
    %297 = arith.addf %291, %296 : vector<16x16xf32>
    %298 = vector.extract_strided_slice %282 {offsets = [2, 0], sizes = [16, 16], strides = [1, 1]} : vector<26x16xf32> to vector<16x16xf32>
    %299 = vector.extract_strided_slice %282 {offsets = [8, 0], sizes = [16, 16], strides = [1, 1]} : vector<26x16xf32> to vector<16x16xf32>
    %300 = arith.addf %298, %299 : vector<16x16xf32>
    %cst_64 = arith.constant 0.0360007733 : f32
    %301 = vector.broadcast %cst_64 : f32 to vector<16x16xf32>
    %302 = arith.mulf %301, %300 : vector<16x16xf32>
    %303 = arith.addf %297, %302 : vector<16x16xf32>
    %304 = vector.extract_strided_slice %282 {offsets = [3, 0], sizes = [16, 16], strides = [1, 1]} : vector<26x16xf32> to vector<16x16xf32>
    %305 = vector.extract_strided_slice %282 {offsets = [7, 0], sizes = [16, 16], strides = [1, 1]} : vector<26x16xf32> to vector<16x16xf32>
    %306 = arith.addf %304, %305 : vector<16x16xf32>
    %cst_65 = arith.constant 0.109360687 : f32
    %307 = vector.broadcast %cst_65 : f32 to vector<16x16xf32>
    %308 = arith.mulf %307, %306 : vector<16x16xf32>
    %309 = arith.addf %303, %308 : vector<16x16xf32>
    %310 = vector.extract_strided_slice %282 {offsets = [4, 0], sizes = [16, 16], strides = [1, 1]} : vector<26x16xf32> to vector<16x16xf32>
    %311 = vector.extract_strided_slice %282 {offsets = [6, 0], sizes = [16, 16], strides = [1, 1]} : vector<26x16xf32> to vector<16x16xf32>
    %312 = arith.addf %310, %311 : vector<16x16xf32>
    %cst_66 = arith.constant 0.213005543 : f32
    %313 = vector.broadcast %cst_66 : f32 to vector<16x16xf32>
    %314 = arith.mulf %313, %312 : vector<16x16xf32>
    %315 = arith.addf %309, %314 : vector<16x16xf32>
    %316 = arith.subf %315, %279 : vector<16x16xf32>
    %317 = arith.mulf %212, %212 : vector<26x16xf32>
    %318 = vector.extract_strided_slice %317 {offsets = [5, 0], sizes = [16, 16], strides = [1, 1]} : vector<26x16xf32> to vector<16x16xf32>
    %cst_67 = arith.constant 0.266011715 : f32
    %319 = vector.broadcast %cst_67 : f32 to vector<16x16xf32>
    %320 = arith.mulf %319, %318 : vector<16x16xf32>
    %321 = vector.extract_strided_slice %317 {offsets = [0, 0], sizes = [16, 16], strides = [1, 1]} : vector<26x16xf32> to vector<16x16xf32>
    %322 = vector.extract_strided_slice %317 {offsets = [10, 0], sizes = [16, 16], strides = [1, 1]} : vector<26x16xf32> to vector<16x16xf32>
    %323 = arith.addf %321, %322 : vector<16x16xf32>
    %cst_68 = arith.constant 0.00102838012 : f32
    %324 = vector.broadcast %cst_68 : f32 to vector<16x16xf32>
    %325 = arith.mulf %324, %323 : vector<16x16xf32>
    %326 = arith.addf %320, %325 : vector<16x16xf32>
    %327 = vector.extract_strided_slice %317 {offsets = [1, 0], sizes = [16, 16], strides = [1, 1]} : vector<26x16xf32> to vector<16x16xf32>
    %328 = vector.extract_strided_slice %317 {offsets = [9, 0], sizes = [16, 16], strides = [1, 1]} : vector<26x16xf32> to vector<16x16xf32>
    %329 = arith.addf %327, %328 : vector<16x16xf32>
    %cst_69 = arith.constant 0.00759875821 : f32
    %330 = vector.broadcast %cst_69 : f32 to vector<16x16xf32>
    %331 = arith.mulf %330, %329 : vector<16x16xf32>
    %332 = arith.addf %326, %331 : vector<16x16xf32>
    %333 = vector.extract_strided_slice %317 {offsets = [2, 0], sizes = [16, 16], strides = [1, 1]} : vector<26x16xf32> to vector<16x16xf32>
    %334 = vector.extract_strided_slice %317 {offsets = [8, 0], sizes = [16, 16], strides = [1, 1]} : vector<26x16xf32> to vector<16x16xf32>
    %335 = arith.addf %333, %334 : vector<16x16xf32>
    %cst_70 = arith.constant 0.0360007733 : f32
    %336 = vector.broadcast %cst_70 : f32 to vector<16x16xf32>
    %337 = arith.mulf %336, %335 : vector<16x16xf32>
    %338 = arith.addf %332, %337 : vector<16x16xf32>
    %339 = vector.extract_strided_slice %317 {offsets = [3, 0], sizes = [16, 16], strides = [1, 1]} : vector<26x16xf32> to vector<16x16xf32>
    %340 = vector.extract_strided_slice %317 {offsets = [7, 0], sizes = [16, 16], strides = [1, 1]} : vector<26x16xf32> to vector<16x16xf32>
    %341 = arith.addf %339, %340 : vector<16x16xf32>
    %cst_71 = arith.constant 0.109360687 : f32
    %342 = vector.broadcast %cst_71 : f32 to vector<16x16xf32>
    %343 = arith.mulf %342, %341 : vector<16x16xf32>
    %344 = arith.addf %338, %343 : vector<16x16xf32>
    %345 = vector.extract_strided_slice %317 {offsets = [4, 0], sizes = [16, 16], strides = [1, 1]} : vector<26x16xf32> to vector<16x16xf32>
    %346 = vector.extract_strided_slice %317 {offsets = [6, 0], sizes = [16, 16], strides = [1, 1]} : vector<26x16xf32> to vector<16x16xf32>
    %347 = arith.addf %345, %346 : vector<16x16xf32>
    %cst_72 = arith.constant 0.213005543 : f32
    %348 = vector.broadcast %cst_72 : f32 to vector<16x16xf32>
    %349 = arith.mulf %348, %347 : vector<16x16xf32>
    %350 = arith.addf %344, %349 : vector<16x16xf32>
    %351 = arith.subf %350, %280 : vector<16x16xf32>
    %352 = arith.mulf %211, %212 : vector<26x16xf32>
    %353 = vector.extract_strided_slice %352 {offsets = [5, 0], sizes = [16, 16], strides = [1, 1]} : vector<26x16xf32> to vector<16x16xf32>
    %cst_73 = arith.constant 0.266011715 : f32
    %354 = vector.broadcast %cst_73 : f32 to vector<16x16xf32>
    %355 = arith.mulf %354, %353 : vector<16x16xf32>
    %356 = vector.extract_strided_slice %352 {offsets = [0, 0], sizes = [16, 16], strides = [1, 1]} : vector<26x16xf32> to vector<16x16xf32>
    %357 = vector.extract_strided_slice %352 {offsets = [10, 0], sizes = [16, 16], strides = [1, 1]} : vector<26x16xf32> to vector<16x16xf32>
    %358 = arith.addf %356, %357 : vector<16x16xf32>
    %cst_74 = arith.constant 0.00102838012 : f32
    %359 = vector.broadcast %cst_74 : f32 to vector<16x16xf32>
    %360 = arith.mulf %359, %358 : vector<16x16xf32>
    %361 = arith.addf %355, %360 : vector<16x16xf32>
    %362 = vector.extract_strided_slice %352 {offsets = [1, 0], sizes = [16, 16], strides = [1, 1]} : vector<26x16xf32> to vector<16x16xf32>
    %363 = vector.extract_strided_slice %352 {offsets = [9, 0], sizes = [16, 16], strides = [1, 1]} : vector<26x16xf32> to vector<16x16xf32>
    %364 = arith.addf %362, %363 : vector<16x16xf32>
    %cst_75 = arith.constant 0.00759875821 : f32
    %365 = vector.broadcast %cst_75 : f32 to vector<16x16xf32>
    %366 = arith.mulf %365, %364 : vector<16x16xf32>
    %367 = arith.addf %361, %366 : vector<16x16xf32>
    %368 = vector.extract_strided_slice %352 {offsets = [2, 0], sizes = [16, 16], strides = [1, 1]} : vector<26x16xf32> to vector<16x16xf32>
    %369 = vector.extract_strided_slice %352 {offsets = [8, 0], sizes = [16, 16], strides = [1, 1]} : vector<26x16xf32> to vector<16x16xf32>
    %370 = arith.addf %368, %369 : vector<16x16xf32>
    %cst_76 = arith.constant 0.0360007733 : f32
    %371 = vector.broadcast %cst_76 : f32 to vector<16x16xf32>
    %372 = arith.mulf %371, %370 : vector<16x16xf32>
    %373 = arith.addf %367, %372 : vector<16x16xf32>
    %374 = vector.extract_strided_slice %352 {offsets = [3, 0], sizes = [16, 16], strides = [1, 1]} : vector<26x16xf32> to vector<16x16xf32>
    %375 = vector.extract_strided_slice %352 {offsets = [7, 0], sizes = [16, 16], strides = [1, 1]} : vector<26x16xf32> to vector<16x16xf32>
    %376 = arith.addf %374, %375 : vector<16x16xf32>
    %cst_77 = arith.constant 0.109360687 : f32
    %377 = vector.broadcast %cst_77 : f32 to vector<16x16xf32>
    %378 = arith.mulf %377, %376 : vector<16x16xf32>
    %379 = arith.addf %373, %378 : vector<16x16xf32>
    %380 = vector.extract_strided_slice %352 {offsets = [4, 0], sizes = [16, 16], strides = [1, 1]} : vector<26x16xf32> to vector<16x16xf32>
    %381 = vector.extract_strided_slice %352 {offsets = [6, 0], sizes = [16, 16], strides = [1, 1]} : vector<26x16xf32> to vector<16x16xf32>
    %382 = arith.addf %380, %381 : vector<16x16xf32>
    %cst_78 = arith.constant 0.213005543 : f32
    %383 = vector.broadcast %cst_78 : f32 to vector<16x16xf32>
    %384 = arith.mulf %383, %382 : vector<16x16xf32>
    %385 = arith.addf %379, %384 : vector<16x16xf32>
    %386 = arith.subf %385, %281 : vector<16x16xf32>
    %cst_79 = arith.constant 2.000000e+00 : f32
    %387 = vector.broadcast %cst_79 : f32 to vector<16x16xf32>
    %388 = arith.mulf %387, %281 : vector<16x16xf32>
    %cst_80 = arith.constant 9.99999974E-5 : f32
    %389 = vector.broadcast %cst_80 : f32 to vector<16x16xf32>
    %390 = arith.addf %388, %389 : vector<16x16xf32>
    %cst_81 = arith.constant 2.000000e+00 : f32
    %391 = vector.broadcast %cst_81 : f32 to vector<16x16xf32>
    %392 = arith.mulf %391, %386 : vector<16x16xf32>
    %cst_82 = arith.constant 8.99999984E-4 : f32
    %393 = vector.broadcast %cst_82 : f32 to vector<16x16xf32>
    %394 = arith.addf %392, %393 : vector<16x16xf32>
    %395 = arith.mulf %390, %394 : vector<16x16xf32>
    %396 = arith.addf %279, %280 : vector<16x16xf32>
    %cst_83 = arith.constant 9.99999974E-5 : f32
    %397 = vector.broadcast %cst_83 : f32 to vector<16x16xf32>
    %398 = arith.addf %396, %397 : vector<16x16xf32>
    %399 = arith.addf %316, %351 : vector<16x16xf32>
    %cst_84 = arith.constant 8.99999984E-4 : f32
    %400 = vector.broadcast %cst_84 : f32 to vector<16x16xf32>
    %401 = arith.addf %399, %400 : vector<16x16xf32>
    %402 = arith.mulf %398, %401 : vector<16x16xf32>
    %403 = tpu.reciprocal %402 {approx = true} : vector<16x16xf32> -> vector<16x16xf32>
    %404 = arith.mulf %402, %403 : vector<16x16xf32>
    %cst_85 = arith.constant 2.000000e+00 : f32
    %405 = vector.broadcast %cst_85 : f32 to vector<16x16xf32>
    %406 = arith.subf %405, %404 : vector<16x16xf32>
    %407 = arith.mulf %403, %406 : vector<16x16xf32>
    %408 = arith.mulf %395, %407 : vector<16x16xf32>
    %cst_86 = arith.constant dense<0.000000e+00> : vector<16xf32>
    %409 = vector.multi_reduction <add>, %408, %cst_86 [0] : vector<16x16xf32> to vector<16xf32>
    %410 = vector.shape_cast %409 : vector<16xf32> to vector<1x16xf32>
    %c0_87 = arith.constant 0 : index
    %c0_88 = arith.constant 0 : index
    %c0_89 = arith.constant 0 : index
    %411 = vector.load %arg6[%c0_87, %c0_88, %c0_89] : memref<1x1x16xf32, #tpu.memory_space<vmem>>, vector<1x1x16xf32>
    %412 = vector.shape_cast %411 : vector<1x1x16xf32> to vector<1x16xf32>
    %413 = vector.shape_cast %410 : vector<1x16xf32> to vector<1x1x16xf32>
    tpu.vector_store %arg6[%c0_87, %c0_88, %c0_89], %413 {strides = array<i32>} : memref<1x1x16xf32, #tpu.memory_space<vmem>>, vector<1x1x16xf32>,
    return
  }
  func.func @transform_0(%arg0: i32, %arg1: i32) -> (i32, i32, i32) {
    %c0_i32 = arith.constant 0 : i32
    %c0_i32_0 = arith.constant 0 : i32
    return %arg0, %c0_i32, %arg1 : i32, i32, i32
  }
  func.func @transform_1(%arg0: i32, %arg1: i32) -> (i32, i32, i32) {
    %c0_i32 = arith.constant 0 : i32
    %c0_i32_0 = arith.constant 0 : i32
    return %arg0, %c0_i32, %arg1 : i32, i32, i32
  }
  func.func @transform_2(%arg0: i32, %arg1: i32) -> (i32, i32, i32) {
    %c0_i32 = arith.constant 0 : i32
    %c0_i32_0 = arith.constant 0 : i32
    return %arg0, %c0_i32, %arg1 : i32, i32, i32
  }
  func.func @transform_3(%arg0: i32, %arg1: i32) -> (i32, i32, i32) {
    %c0_i32 = arith.constant 0 : i32
    %c0_i32_0 = arith.constant 0 : i32
    return %arg0, %c0_i32, %arg1 : i32, i32, i32
  }
  func.func @transform_4(%arg0: i32, %arg1: i32) -> (i32, i32, i32) {
    %c0_i32 = arith.constant 0 : i32
    %c0_i32_0 = arith.constant 0 : i32
    return %arg0, %c0_i32, %arg1 : i32, i32, i32
  }
}

</mosaic_0001>

<bundles_post_ra>
// kernel: c_ssim_loss.1
= control target key start
LH: loop header
LB: loop body
LE: loop exit
PB: predicated region body
PF: predicated region fallthrough
CT: control target
= control target key end

     0   :  { %s2047_s15 = smov 0   ;;  %s2049_s16 = smov 0   ;;  %s2962_s0 = inlined_call_operand.vmem [shape: f32[2,26,16], index: 0, kind: input, shape index: {}]   ;;  %s2963_s1 = inlined_call_operand.vmem [shape: f32[2,26,16], index: 1, kind: input, shape index: {}]   ;;  %s2964_s2 = inlined_call_operand.vmem [shape: f32[2,26,16], index: 2, kind: input, shape index: {}]   ;;  %s2965_s3 = inlined_call_operand.vmem [shape: f32[2,1,16], index: 3, kind: output, shape index: {0}]   ;;  %s2966_s4 = inlined_call_operand.vmem [shape: f32[2,1,16], index: 4, kind: output, shape index: {1}]  }
   0x1   :  { %s2051_s17 = smov 0  }
   0x2 LB: > { %s27_s18 = sadd.s32 1, %s2016_s16  ;;  %p1950_p0 = scmp.ge.s32.totalorder %s2020_s17, 1  ;;  %s2020_s17 = sphi %s2051_s17, %s15_s17   ;;  %s2016_s16 = sphi %s2049_s16, %s2975_s16   ;;  %s2012_s15 = sphi %s2047_s15, %s2974_s15  }
   0x3   : > { %p29_p1 = scmp.ge.s32.totalorder %s27_s18, 2  ;;  %p216_p2 = scmp.lt.s32.totalorder %s2020_s17, 3 }
   0x5   : > { %s2977_s18 = smov (%p29_p1, %s27_s18), 0  ;;  %p217_p3 = pnand %p1950_p0, %p216_p2 }
   0x7   : > { %220 = sbr.rel (%p217_p3) target bundleno = 314 (0x13a), region = 32 }
   0xc   : > { %p268_p4 = scmp.lt.s32.totalorder %s2012_s15, 1  ;;  %vm334_vm0 = vcmask 1045504   ;;  %vm367_vm1 = vcmask 1043456   ;;  %vm379_vm2 = vcmask 1041408   ;;  %vm348_vm3 = vcmask 1044480  }
   0xd   : > { %vm395_vm4 = vcmask 1042432   ;;  %vm449_vm5 = vcmask 1040384   ;;  %vm1054_vm6 = vcmask 130048   ;;  %vm1064_vm7 = vcmask 122880  }
   0xe   : > { %s2979_s15 = smov (!%p268_p4, %s2012_s15), 1 }
   0xf   : > { %s1959_s19 = sshll.u32 %s2979_s15, 5  ;;  %s297_s5 = scalar_lea.vmem %s2965_s3, %s2979_s15 }
  0x10   : > { %s275_s22 = scalar_lea.vmem %s2962_s0, %s1959_s19  ;;  %s2074_s25 = scalar_lea.vmem %s2963_s1, %s1959_s19 }
  0x11   : > { %s291_s28 = scalar_lea.vmem %s2964_s2, %s1959_s19  ;;  %v304_v0 = vld [vmem:[%s275_s22] sm:$0xff]  ;;  %v305_v1 = vld [vmem:[%s275_s22 + $0x8] sm:$0xff]  ;;  %v306_v3 = vld [vmem:[%s275_s22 + $0x10] sm:$0xff]  ;;  %s303_s8 = scalar_lea.vmem %s2966_s4, %s2979_s15 }
  0x12   : > { %v308_v2 = vld [vmem:[%s2074_s25] sm:$0xff]  ;;  %v2080_v4 = vld [vmem:[%s275_s22 + $0x18] sm:$0x3]  ;;  %v2082_v6 = vld [vmem:[%s291_s28 + $0x8] sm:$0xff] }
  0x13   : > { %v312_v5 = vld [vmem:[%s291_s28] sm:$0xff]  ;;  %v2084_v7 = vld [vmem:[%s291_s28 + $0x10] sm:$0xff]  ;;  %v2086_v8 = vld [vmem:[%s291_s28 + $0x18] sm:$0x3]  ;;  %v317_v14 = vsub.f32 1.0, %v2082_v6  ;;  %v2106_v19 = vmul.f32 %v2082_v6, %v305_v1 }
  0x14   : > { %v316_v9 = vsub.f32 1.0, %v312_v5  ;;  %v2088_v10 = vmul.f32 %v312_v5, %v304_v0  ;;  %v2090_v11 = vmul.f32 %v312_v5, %v308_v2  ;;  %v2093_v12 = vld [vmem:[%s2074_s25 + $0x8] sm:$0xff]  ;;  %v2096_v13 = vld [vmem:[%s2074_s25 + $0x10] sm:$0xff]  ;;  %v318_v15 = vsub.f32 1.0, %v2084_v7 }
  0x15   : > { %v319_v16 = vsub.f32 1.0, %v2086_v8  ;;  %v2108_v20 = vmul.f32 %v317_v14, %v305_v1  ;;  %v2118_v23 = vmul.f32 %v2084_v7, %v306_v3  ;;  %v2121_v24 = vmul.f32 %v317_v14, %v2093_v12 }
  0x16   : > { %2969 = vst [vmem:[#allocation2_spill] sm:$0xff] %v2090_v11  ;;  %v2101_v17 = vmul.f32 %v316_v9, %v304_v0  ;;  %v2103_v18 = vmul.f32 %v316_v9, %v308_v2  ;;  %v2110_v21 = vmul.f32 %v318_v15, %v306_v3  ;;  %v2124_v25 = vmul.f32 %v318_v15, %v2096_v13 }
  0x17   : > { %v2115_v22 = vmul.f32 %v319_v16, %v2080_v4  ;;  %v329_v28 = vmul.f32 0.26601171, %v2108_v20  ;;  %v335_v30 = vrot.slane %v2108_v20, 2  ;;  %v380_v37 = vrot.slane %v2108_v20, 6 }
  0x18   : > { %v328_v26 = vmul.f32 0.26601171, %v2101_v17  ;;  %v408_v27 = vrot.slane %v2101_v17, 4  ;;  %v330_v29 = vmul.f32 0.26601171, %v2110_v21  ;;  %v2132_v31 = vrot.slane %v2110_v21, 2 }
  0x19   : > { %v338_v32 = vrot.slane %v2115_v22, 2  ;;  %v358_v33 = vadd.f32 %v2108_v20, %v2101_v17  ;;  %v359_v34 = vadd.f32 %v2110_v21, %v2108_v20  ;;  %v360_v35 = vadd.f32 %v2115_v22, %v2110_v21 }
  0x1a   : > { %v337_v36 = vsel %vm334_vm0, %v335_v30, %v2132_v31  ;;  %v381_v38 = vrot.slane %v2110_v21, 6  ;;  %v409_v39 = vrot.slane %v2108_v20, 4  ;;  %v386_v47 = vadd.f32 %v380_v37, %v2101_v17 }
  0x1b   : > { %v339_v40 = vsel %vm334_vm0, %v2132_v31, %v338_v32  ;;  %v342_v41 = vadd.f32 %v337_v36, %v2101_v17  ;;  %v361_v42 = vmul.f32 0.007598758, %v358_v33  ;;  %v362_v43 = vmul.f32 0.007598758, %v359_v34  ;;  %v2162_v32 = vld [vmem:[%s2074_s25 + $0x18] sm:$0x3] }
  0x1c   : > { %v343_v44 = vadd.f32 %v339_v40, %v2108_v20  ;;  %v363_v45 = vmul.f32 0.007598758, %v360_v35  ;;  %v382_v46 = vsel %vm379_vm2, %v380_v37, %v381_v38  ;;  %v388_v54 = vadd.f32 %v381_v38, %v2110_v21 }
  0x1d   : > { %v344_v48 = vmul.f32 0.0010283801, %v342_v41  ;;  %v368_v49 = vrot.slane %v361_v42, 4  ;;  %v369_v50 = vrot.slane %v362_v43, 4  ;;  %v387_v51 = vadd.f32 %v382_v46, %v2108_v20 }
  0x1e   : > { %v345_v52 = vmul.f32 0.0010283801, %v343_v44  ;;  %v371_v53 = vrot.slane %v363_v45, 4  ;;  %v389_v55 = vmul.f32 0.036000773, %v386_v47  ;;  %v410_v59 = vsel %vm367_vm1, %v408_v27, %v409_v39 }
  0x1f   : > { %v349_v56 = vrot.slane %v344_v48, 3  ;;  %v370_v57 = vsel %vm367_vm1, %v368_v49, %v369_v50  ;;  %v390_v58 = vmul.f32 0.036000773, %v387_v51  ;;  %v391_v62 = vmul.f32 0.036000773, %v388_v54 }
  0x20   : > { %v350_v60 = vrot.slane %v345_v52, 3  ;;  %v372_v61 = vsel %vm367_vm1, %v369_v50, %v371_v53  ;;  %v396_v63 = vrot.slane %v389_v55, 5  ;;  %v411_v2 = vrot.slane %v2110_v21, 4 }
  0x21   : > { %v355_v0 = vadd.f32 %v349_v56, %v328_v26  ;;  %v397_v1 = vrot.slane %v390_v58, 5  ;;  %v416_v3 = vadd.f32 %v410_v59, %v2101_v17  ;;  %v399_v14 = vrot.slane %v391_v62, 5 }
  0x22   : > { %v351_v5 = vsel %vm348_vm3, %v349_v56, %v350_v60  ;;  %v357_v9 = vadd.f32 %v350_v60, %v330_v29  ;;  %v436_v15 = vrot.slane %v2101_v17, 2  ;;  %v412_v26 = vsel %vm367_vm1, %v409_v39, %v411_v2 }
  0x23   : > { %v356_v27 = vadd.f32 %v351_v5, %v329_v28  ;;  %v376_v33 = vadd.f32 %v368_v49, %v355_v0  ;;  %v398_v34 = vsel %vm395_vm4, %v396_v63, %v397_v1  ;;  %v400_v37 = vsel %vm395_vm4, %v397_v1, %v399_v14 }
  0x24   : > { %v378_v35 = vadd.f32 %v372_v61, %v357_v9  ;;  %v417_v38 = vadd.f32 %v412_v26, %v2108_v20  ;;  %v418_v40 = vadd.f32 %v411_v2, %v2110_v21  ;;  %v419_v42 = vmul.f32 0.10936069, %v416_v3 }
  0x25   : > { %v377_v29 = vadd.f32 %v370_v57, %v356_v27  ;;  %v404_v41 = vadd.f32 %v396_v63, %v376_v33  ;;  %v437_v43 = vsel %vm334_vm0, %v436_v15, %v335_v30  ;;  %v2173_v28 = vmul.f32 %v319_v16, %v2162_v32 }
  0x26   : > { %v420_v44 = vmul.f32 0.10936069, %v417_v38  ;;  %v421_v45 = vmul.f32 0.10936069, %v418_v40  ;;  %v440_v39 = vadd.f32 %v437_v43, %v2101_v17  ;;  %v425_v47 = vrot.slane %v419_v42, 6 }
  0x27   : > { %v405_v46 = vadd.f32 %v398_v34, %v377_v29  ;;  %v441_v48 = vadd.f32 %v337_v36, %v2108_v20  ;;  %v442_v49 = vadd.f32 %v2132_v31, %v2110_v21  ;;  %v406_v50 = vadd.f32 %v400_v37, %v378_v35 }
  0x28   : > { %v426_v51 = vrot.slane %v420_v44, 6  ;;  %v428_v52 = vrot.slane %v421_v45, 6  ;;  %v443_v30 = vmul.f32 0.21300554, %v440_v39  ;;  %v433_v53 = vadd.f32 %v425_v47, %v404_v41 }
  0x29   : > { %v444_v54 = vmul.f32 0.21300554, %v441_v48  ;;  %v445_v55 = vmul.f32 0.21300554, %v442_v49  ;;  %v461_v16 = vmul.f32 0.26601171, %v2103_v18  ;;  %v489_v5 = vadd.f32 %v2121_v24, %v2103_v18 }
  0x2a   : > { %v427_v56 = vsel %vm379_vm2, %v425_v47, %v426_v51  ;;  %v429_v57 = vsel %vm379_vm2, %v426_v51, %v428_v52  ;;  %v450_v58 = vrot.slane %v443_v30, 7  ;;  %v462_v59 = vmul.f32 0.26601171, %v2121_v24 }
  0x2b   : > { %v434_v36 = vadd.f32 %v427_v56, %v405_v46  ;;  %v451_v60 = vrot.slane %v444_v54, 7  ;;  %v453_v61 = vrot.slane %v445_v55, 7  ;;  %v463_v31 = vmul.f32 0.26601171, %v2124_v25 }
  0x2c   : > { %v435_v62 = vadd.f32 %v429_v57, %v406_v50  ;;  %v467_v63 = vrot.slane %v2121_v24, 2  ;;  %v2186_v0 = vrot.slane %v2124_v25, 2  ;;  %v470_v1 = vrot.slane %v2173_v28, 2 }
  0x2d   : > { %v452_v2 = vsel %vm449_vm5, %v450_v58, %v451_v60  ;;  %v2190_v3 = vadd.f32 %v450_v58, %v433_v53  ;;  %v490_v9 = vadd.f32 %v2124_v25, %v2121_v24  ;;  %v454_v14 = vsel %vm449_vm5, %v451_v60, %v453_v61 }
  0x2e   : > { %v2197_v15 = vadd.f32 %v452_v2, %v434_v36  ;;  %v469_v27 = vsel %vm334_vm0, %v467_v63, %v2186_v0  ;;  %v471_v33 = vsel %vm334_vm0, %v2186_v0, %v470_v1  ;;  %v491_v35 = vadd.f32 %v2173_v28, %v2124_v25 }
  0x2f   : > { %v474_v34 = vadd.f32 %v469_v27, %v2103_v18  ;;  %v475_v26 = vadd.f32 %v471_v33, %v2121_v24  ;;  %v492_v37 = vmul.f32 0.007598758, %v489_v5  ;;  %v493_v38 = vmul.f32 0.007598758, %v490_v9 }
  0x30   : > { %v509_v40 = vrot.slane %v2121_v24, 6  ;;  %v510_v29 = vrot.slane %v2124_v25, 6  ;;  %v536_v41 = vrot.slane %v2103_v18, 4  ;;  %v494_v44 = vmul.f32 0.007598758, %v491_v35 }
  0x31   : > { %v476_v42 = vmul.f32 0.0010283801, %v474_v34  ;;  %v477_v43 = vmul.f32 0.0010283801, %v475_v26  ;;  %v569_v45 = vadd.f32 %v469_v27, %v2121_v24  ;;  %v498_v39 = vrot.slane %v492_v37, 4 }
  0x32   : > { %v499_v46 = vrot.slane %v493_v38, 4  ;;  %v511_v47 = vsel %vm379_vm2, %v509_v40, %v510_v29  ;;  %v515_v48 = vadd.f32 %v509_v40, %v2103_v18  ;;  %v501_v51 = vrot.slane %v494_v44, 4 }
  0x33   : > { %v480_v49 = vrot.slane %v476_v42, 3  ;;  %v481_v50 = vrot.slane %v477_v43, 3  ;;  %v516_v52 = vadd.f32 %v511_v47, %v2121_v24  ;;  %v517_v53 = vadd.f32 %v510_v29, %v2124_v25 }
  0x34   : > { %v500_v30 = vsel %vm367_vm1, %v498_v39, %v499_v46  ;;  %v518_v54 = vmul.f32 0.036000773, %v515_v48  ;;  %v537_v55 = vrot.slane %v2121_v24, 4  ;;  %v502_v36 = vsel %vm367_vm1, %v499_v46, %v501_v51 }
  0x35   : > { %v482_v56 = vsel %vm348_vm3, %v480_v49, %v481_v50  ;;  %v486_v57 = vadd.f32 %v480_v49, %v461_v16  ;;  %v488_v58 = vadd.f32 %v481_v50, %v463_v31  ;;  %v519_v61 = vmul.f32 0.036000773, %v516_v52 }
  0x36   : > { %v487_v60 = vadd.f32 %v482_v56, %v462_v59  ;;  %v520_v1 = vmul.f32 0.036000773, %v517_v53  ;;  %v524_v2 = vrot.slane %v518_v54, 5  ;;  %v538_v27 = vsel %vm367_vm1, %v536_v41, %v537_v55 }
  0x37   : > { %v506_v5 = vadd.f32 %v498_v39, %v486_v57  ;;  %v508_v9 = vadd.f32 %v502_v36, %v488_v58  ;;  %v539_v33 = vrot.slane %v2124_v25, 4  ;;  %v525_v26 = vrot.slane %v519_v61, 5 }
  0x38   : > { %v507_v34 = vadd.f32 %v500_v30, %v487_v60  ;;  %v527_v35 = vrot.slane %v520_v1, 5  ;;  %v544_v37 = vadd.f32 %v538_v27, %v2103_v18  ;;  %v564_v59 = vrot.slane %v2103_v18, 2 }
  0x39   : > { %v532_v38 = vadd.f32 %v524_v2, %v506_v5  ;;  %v540_v16 = vsel %vm367_vm1, %v537_v55, %v539_v33  ;;  %v546_v31 = vadd.f32 %v539_v33, %v2124_v25  ;;  %v526_v40 = vsel %vm395_vm4, %v524_v2, %v525_v26 }
  0x3a   : > { %v528_v29 = vsel %vm395_vm4, %v525_v26, %v527_v35  ;;  %v545_v41 = vadd.f32 %v540_v16, %v2121_v24  ;;  %v547_v42 = vmul.f32 0.10936069, %v544_v37  ;;  %v2230_v43 = vadd.f32 %v454_v14, %v435_v62 }
  0x3b   : > { %v533_v44 = vadd.f32 %v526_v40, %v507_v34  ;;  %v549_v39 = vmul.f32 0.10936069, %v546_v31  ;;  %v565_v46 = vsel %vm334_vm0, %v564_v59, %v467_v63  ;;  %v570_v50 = vadd.f32 %v2186_v0, %v2124_v25 }
  0x3c   : > { %v548_v47 = vmul.f32 0.10936069, %v545_v41  ;;  %v553_v48 = vrot.slane %v547_v42, 6  ;;  %v568_v49 = vadd.f32 %v565_v46, %v2103_v18  ;;  %v534_v51 = vadd.f32 %v528_v29, %v508_v9 }
  0x3d   : > { %v556_v52 = vrot.slane %v549_v39, 6  ;;  %v572_v30 = vmul.f32 0.21300554, %v569_v45  ;;  %v2240_v62 = vmul.f32 %v2190_v3, %v2190_v3  ;;  %v573_v55 = vmul.f32 0.21300554, %v570_v50 }
  0x3e   : > { %v554_v14 = vrot.slane %v548_v47, 6  ;;  %v561_v53 = vadd.f32 %v553_v48, %v532_v38  ;;  %v571_v54 = vmul.f32 0.21300554, %v568_v49  ;;  %v2244_v63 = vmul.f32 %v2197_v15, %v2197_v15 }
  0x3f   : > { %v578_v56 = vrot.slane %v572_v30, 7  ;;  %v2248_v57 = vmul.f32 %v2230_v43, %v2230_v43  ;;  %v2252_v0 = vmul.f32 %v2108_v20, %v2108_v20  ;;  %v580_v60 = vrot.slane %v573_v55, 7 }
  0x40   : > { %v555_v45 = vsel %vm379_vm2, %v553_v48, %v554_v14  ;;  %v557_v58 = vsel %vm379_vm2, %v554_v14, %v556_v52  ;;  %v577_v36 = vrot.slane %v571_v54, 7  ;;  %v2258_v2 = vmul.f32 %v2101_v17, %v2101_v17 }
  0x41   : > { %v562_v61 = vadd.f32 %v555_v45, %v533_v44  ;;  %v563_v1 = vadd.f32 %v557_v58, %v534_v51  ;;  %v2262_v5 = vmul.f32 %v2110_v21, %v2110_v21  ;;  %v581_v27 = vsel %vm449_vm5, %v578_v56, %v580_v60 }
  0x42   : > { %v579_v9 = vsel %vm449_vm5, %v577_v36, %v578_v56  ;;  %v585_v33 = vadd.f32 %v577_v36, %v561_v53  ;;  %v600_v34 = vmul.f32 %v2115_v22, %v2115_v22  ;;  %v601_v37 = vmul.f32 0.26601171, %v2258_v2 }
  0x43   : > { %v586_v26 = vadd.f32 %v579_v9, %v562_v61  ;;  %v2268_v35 = vadd.f32 %v581_v27, %v563_v1  ;;  %v602_v38 = vmul.f32 0.26601171, %v2252_v0  ;;  %v603_v31 = vmul.f32 0.26601171, %v2262_v5 }
  0x44   : > { %v2272_v16 = vmul.f32 %v585_v33, %v585_v33  ;;  %v607_v59 = vrot.slane %v2252_v0, 2  ;;  %v608_v40 = vrot.slane %v2262_v5, 2  ;;  %v2284_v42 = vmul.f32 %v585_v33, %v2190_v3 }
  0x45   : > { %v2277_v29 = vmul.f32 %v586_v26, %v586_v26  ;;  %v2281_v41 = vmul.f32 %v2268_v35, %v2268_v35  ;;  %v2287_v44 = vmul.f32 %v586_v26, %v2197_v15  ;;  %v610_v46 = vrot.slane %v600_v34, 2 }
  0x46   : > { %v609_v39 = vsel %vm334_vm0, %v607_v59, %v608_v40  ;;  %v629_v47 = vadd.f32 %v2252_v0, %v2258_v2  ;;  %v630_v48 = vadd.f32 %v2262_v5, %v2252_v0  ;;  %v631_v50 = vadd.f32 %v600_v34, %v2262_v5 }
  0x47   : > { %v614_v49 = vadd.f32 %v609_v39, %v2258_v2  ;;  %v649_v3 = vrot.slane %v2252_v0, 6  ;;  %v650_v15 = vrot.slane %v2262_v5, 6  ;;  %v611_v51 = vsel %vm334_vm0, %v608_v40, %v610_v46 }
  0x48   : > { %v632_v52 = vmul.f32 0.007598758, %v629_v47  ;;  %v633_v30 = vmul.f32 0.007598758, %v630_v48  ;;  %v676_v14 = vrot.slane %v2258_v2, 4  ;;  %v615_v53 = vadd.f32 %v611_v51, %v2252_v0 }
  0x49   : > { %v616_v54 = vmul.f32 0.0010283801, %v614_v49  ;;  %v634_v55 = vmul.f32 0.007598758, %v631_v50  ;;  %v651_v56 = vsel %vm379_vm2, %v649_v3, %v650_v15  ;;  %v655_v36 = vadd.f32 %v649_v3, %v2258_v2 }
  0x4a   : > { %v638_v45 = vrot.slane %v632_v52, 4  ;;  %v639_v58 = vrot.slane %v633_v30, 4  ;;  %v656_v60 = vadd.f32 %v651_v56, %v2252_v0  ;;  %v617_v61 = vmul.f32 0.0010283801, %v615_v53 }
  0x4b   : > { %v620_v1 = vrot.slane %v616_v54, 3  ;;  %v641_v9 = vrot.slane %v634_v55, 4  ;;  %v657_v27 = vadd.f32 %v650_v15, %v2262_v5  ;;  %v658_v34 = vmul.f32 0.036000773, %v655_v36 }
  0x4c   : > { %v640_v33 = vsel %vm367_vm1, %v638_v45, %v639_v58  ;;  %v659_v26 = vmul.f32 0.036000773, %v656_v60  ;;  %v677_v46 = vrot.slane %v2252_v0, 4  ;;  %v621_v47 = vrot.slane %v617_v61, 3 }
  0x4d   : > { %v626_v48 = vadd.f32 %v620_v1, %v601_v37  ;;  %v642_v49 = vsel %vm367_vm1, %v639_v58, %v641_v9  ;;  %v660_v50 = vmul.f32 0.036000773, %v657_v27  ;;  %v664_v51 = vrot.slane %v658_v34, 5 }
  0x4e   : > { %v665_v3 = vrot.slane %v659_v26, 5  ;;  %v678_v52 = vsel %vm367_vm1, %v676_v14, %v677_v46  ;;  %v679_v30 = vrot.slane %v2262_v5, 4  ;;  %v622_v53 = vsel %vm348_vm3, %v620_v1, %v621_v47 }
  0x4f   : > { %v628_v15 = vadd.f32 %v621_v47, %v603_v31  ;;  %v646_v54 = vadd.f32 %v638_v45, %v626_v48  ;;  %v667_v55 = vrot.slane %v660_v50, 5  ;;  %v627_v56 = vadd.f32 %v622_v53, %v602_v38 }
  0x50   : > { %v666_v36 = vsel %vm395_vm4, %v664_v51, %v665_v3  ;;  %v680_v60 = vsel %vm367_vm1, %v677_v46, %v679_v30  ;;  %v684_v37 = vadd.f32 %v678_v52, %v2258_v2  ;;  %v686_v34 = vadd.f32 %v679_v30, %v2262_v5 }
  0x51   : > { %v648_v58 = vadd.f32 %v642_v49, %v628_v15  ;;  %v668_v61 = vsel %vm395_vm4, %v665_v3, %v667_v55  ;;  %v672_v9 = vadd.f32 %v664_v51, %v646_v54  ;;  %v685_v14 = vadd.f32 %v680_v60, %v2252_v0 }
  0x52   : > { %v647_v27 = vadd.f32 %v640_v33, %v627_v56  ;;  %v687_v1 = vmul.f32 0.10936069, %v684_v37  ;;  %v704_v31 = vrot.slane %v2258_v2, 2  ;;  %v709_v26 = vadd.f32 %v609_v39, %v2252_v0 }
  0x53   : > { %v674_v45 = vadd.f32 %v668_v61, %v648_v58  ;;  %v688_v38 = vmul.f32 0.10936069, %v685_v14  ;;  %v710_v46 = vadd.f32 %v608_v40, %v2262_v5  ;;  %v689_v48 = vmul.f32 0.10936069, %v686_v34 }
  0x54   : > { %v673_v47 = vadd.f32 %v666_v36, %v647_v27  ;;  %v693_v49 = vrot.slane %v687_v1, 6  ;;  %v705_v50 = vsel %vm334_vm0, %v704_v31, %v607_v59  ;;  %v712_v3 = vmul.f32 0.21300554, %v709_v26 }
  0x55   : > { %v694_v51 = vrot.slane %v688_v38, 6  ;;  %v708_v33 = vadd.f32 %v705_v50, %v2258_v2  ;;  %v713_v52 = vmul.f32 0.21300554, %v710_v46  ;;  %v2328_v30 = vmul.f32 %v2268_v35, %v2230_v43 }
  0x56   : > { %v696_v53 = vrot.slane %v689_v48, 6  ;;  %v701_v39 = vadd.f32 %v693_v49, %v672_v9  ;;  %v2332_v5 = vmul.f32 %v2121_v24, %v2121_v24  ;;  %v718_v15 = vrot.slane %v712_v3, 7 }
  0x57   : > { %v695_v40 = vsel %vm379_vm2, %v693_v49, %v694_v51  ;;  %v711_v0 = vmul.f32 0.21300554, %v708_v33  ;;  %v720_v59 = vrot.slane %v713_v52, 7  ;;  %v2338_v2 = vmul.f32 %v2103_v18, %v2103_v18 }
  0x58   : > { %v697_v54 = vsel %vm379_vm2, %v694_v51, %v696_v53  ;;  %v2342_v43 = vmul.f32 %v2124_v25, %v2124_v25  ;;  %v734_v35 = vmul.f32 %v2173_v28, %v2173_v28  ;;  %v702_v55 = vadd.f32 %v695_v40, %v673_v47 }
  0x59   : > { %v703_v56 = vadd.f32 %v697_v54, %v674_v45  ;;  %v717_v36 = vrot.slane %v711_v0, 7  ;;  %v721_v60 = vsel %vm449_vm5, %v718_v15, %v720_v59  ;;  %v735_v37 = vmul.f32 0.26601171, %v2338_v2 }
  0x5a   : > { %v736_v58 = vmul.f32 0.26601171, %v2332_v5  ;;  %v2967_v61 = vrot.slane %v2332_v5, 2  ;;  %v2351_v9 = vrot.slane %v2342_v43, 2  ;;  %v744_v1 = vrot.slane %v734_v35, 2 }
  0x5b   : > { %v719_v14 = vsel %vm449_vm5, %v717_v36, %v718_v15  ;;  %v2354_v27 = vadd.f32 %v717_v36, %v701_v39  ;;  %v2356_v34 = vadd.f32 %v721_v60, %v703_v56  ;;  %v737_v31 = vmul.f32 0.26601171, %v2342_v43 }
  0x5c   : > { %v743_v45 = vsel %vm334_vm0, %v2967_v61, %v2351_v9  ;;  %v763_v38 = vadd.f32 %v2332_v5, %v2338_v2  ;;  %v764_v26 = vadd.f32 %v2342_v43, %v2332_v5  ;;  %v2367_v46 = vadd.f32 %v719_v14, %v702_v55 }
  0x5d   : > { %v745_v48 = vsel %vm334_vm0, %v2351_v9, %v744_v1  ;;  %v748_v49 = vadd.f32 %v743_v45, %v2338_v2  ;;  %v765_v33 = vadd.f32 %v734_v35, %v2342_v43  ;;  %v783_v39 = vrot.slane %v2332_v5, 6 }
  0x5e   : > { %v749_v51 = vadd.f32 %v745_v48, %v2332_v5  ;;  %v766_v3 = vmul.f32 0.007598758, %v763_v38  ;;  %v767_v53 = vmul.f32 0.007598758, %v764_v26  ;;  %v784_v40 = vrot.slane %v2342_v43, 6 }
  0x5f   : > { %v750_v52 = vmul.f32 0.0010283801, %v748_v49  ;;  %v768_v15 = vmul.f32 0.007598758, %v765_v33  ;;  %v810_v54 = vrot.slane %v2338_v2, 4  ;;  %v789_v60 = vadd.f32 %v783_v39, %v2338_v2 }
  0x60   : > { %v751_v0 = vmul.f32 0.0010283801, %v749_v51  ;;  %v772_v59 = vrot.slane %v766_v3, 4  ;;  %v773_v56 = vrot.slane %v767_v53, 4  ;;  %v785_v36 = vsel %vm379_vm2, %v783_v39, %v784_v40 }
  0x61   : > { %v754_v55 = vrot.slane %v750_v52, 3  ;;  %v775_v35 = vrot.slane %v768_v15, 4  ;;  %v790_v1 = vadd.f32 %v785_v36, %v2332_v5  ;;  %v791_v38 = vadd.f32 %v784_v40, %v2342_v43 }
  0x62   : > { %v755_v14 = vrot.slane %v751_v0, 3  ;;  %v774_v48 = vsel %vm367_vm1, %v772_v59, %v773_v56  ;;  %v792_v49 = vmul.f32 0.036000773, %v789_v60  ;;  %v811_v51 = vrot.slane %v2332_v5, 4 }
  0x63   : > { %v760_v26 = vadd.f32 %v754_v55, %v735_v37  ;;  %v776_v52 = vsel %vm367_vm1, %v773_v56, %v775_v35  ;;  %v793_v53 = vmul.f32 0.036000773, %v790_v1  ;;  %v794_v0 = vmul.f32 0.036000773, %v791_v38 }
  0x64   : > { %v756_v33 = vsel %vm348_vm3, %v754_v55, %v755_v14  ;;  %v762_v3 = vadd.f32 %v755_v14, %v737_v31  ;;  %v798_v15 = vrot.slane %v792_v49, 5  ;;  %v729_v36 = vsub.f32 %v2367_v46, %v2244_v63 }
  0x65   : > { %v761_v50 = vadd.f32 %v756_v33, %v736_v58  ;;  %v780_v39 = vadd.f32 %v772_v59, %v760_v26  ;;  %v799_v40 = vrot.slane %v793_v53, 5  ;;  %v812_v37 = vsel %vm367_vm1, %v810_v54, %v811_v51 }
  0x66   : > { %v813_v60 = vrot.slane %v2342_v43, 4  ;;  %v782_v61 = vadd.f32 %v776_v52, %v762_v3  ;;  %v801_v11 = vrot.slane %v794_v0, 5  ;;  %v818_v31 = vadd.f32 %v812_v37, %v2338_v2 }
  0x67   : > { %v781_v47 = vadd.f32 %v774_v48, %v761_v50  ;;  %v800_v55 = vsel %vm395_vm4, %v798_v15, %v799_v40  ;;  %v838_v56 = vrot.slane %v2338_v2, 2  ;;  %v806_v35 = vadd.f32 %v798_v15, %v780_v39 }
  0x68   : > { %v814_v58 = vsel %vm367_vm1, %v811_v51, %v813_v60  ;;  %v820_v59 = vadd.f32 %v813_v60, %v2342_v43  ;;  %v802_v14 = vsel %vm395_vm4, %v799_v40, %v801_v11  ;;  %v821_v1 = vmul.f32 0.10936069, %v818_v31 }
  0x69   : > { %v819_v54 = vadd.f32 %v814_v58, %v2332_v5  ;;  %v807_v38 = vadd.f32 %v800_v55, %v781_v47  ;;  %v2970_v26 = vrot.slane %v2332_v5, 2  ;;  %v843_v49 = vadd.f32 %v743_v45, %v2332_v5 }
  0x6a   : > { %v823_v50 = vmul.f32 0.10936069, %v820_v59  ;;  %v827_v51 = vrot.slane %v821_v1, 6  ;;  %v844_v52 = vadd.f32 %v2351_v9, %v2342_v43  ;;  %v808_v11 = vadd.f32 %v802_v14, %v782_v61 }
  0x6b   : > { %v839_v48 = vsel %vm334_vm0, %v838_v56, %v2970_v26  ;;  %v822_v33 = vmul.f32 0.10936069, %v819_v54  ;;  %v846_v39 = vmul.f32 0.21300554, %v843_v49  ;;  %v2409_v47 = vmul.f32 %v2121_v24, %v2108_v20 }
  0x6c   : > { %v842_v3 = vadd.f32 %v839_v48, %v2338_v2  ;;  %v830_v53 = vrot.slane %v823_v50, 6  ;;  %v835_v15 = vadd.f32 %v827_v51, %v806_v35  ;;  %v847_v37 = vmul.f32 0.21300554, %v844_v52 }
  0x6d   : > { %v828_v0 = vrot.slane %v822_v33, 6  ;;  %v852_v60 = vrot.slane %v846_v39, 7  ;;  %v2413_v5 = vmul.f32 %v2103_v18, %v2101_v17  ;;  %v2417_v2 = vmul.f32 %v2124_v25, %v2110_v21 }
  0x6e   : > { %v845_v40 = vmul.f32 0.21300554, %v842_v3  ;;  %v868_v43 = vmul.f32 %v2173_v28, %v2115_v22  ;;  %v854_v9 = vrot.slane %v847_v37, 7  ;;  %v870_v17 = vmul.f32 0.26601171, %v2409_v47 }
  0x6f   : > { %v829_v61 = vsel %vm379_vm2, %v827_v51, %v828_v0  ;;  %v831_v20 = vsel %vm379_vm2, %v828_v0, %v830_v53  ;;  %v869_v55 = vmul.f32 0.26601171, %v2413_v5  ;;  %v875_v22 = vrot.slane %v2409_v47, 2 }
  0x70   : > { %v851_v24 = vrot.slane %v845_v40, 7  ;;  %v836_v45 = vadd.f32 %v829_v61, %v807_v38  ;;  %v837_v31 = vadd.f32 %v831_v20, %v808_v11  ;;  %v855_v21 = vsel %vm449_vm5, %v852_v60, %v854_v9 }
  0x71   : > { %v871_v58 = vmul.f32 0.26601171, %v2417_v2  ;;  %v876_v59 = vrot.slane %v2417_v2, 2  ;;  %v878_v56 = vrot.slane %v868_v43, 2  ;;  %v897_v35 = vadd.f32 %v2409_v47, %v2413_v5 }
  0x72   : > { %v853_v18 = vsel %vm449_vm5, %v851_v24, %v852_v60  ;;  %v2427_v25 = vadd.f32 %v851_v24, %v835_v15  ;;  %v2434_v14 = vadd.f32 %v855_v21, %v837_v31  ;;  %v898_v54 = vadd.f32 %v2417_v2, %v2409_v47 }
  0x73   : > { %v2430_v28 = vadd.f32 %v853_v18, %v836_v45  ;;  %v899_v1 = vadd.f32 %v868_v43, %v2417_v2  ;;  %v877_v26 = vsel %vm334_vm0, %v875_v22, %v876_v59  ;;  %v879_v48 = vsel %vm334_vm0, %v876_v59, %v878_v56 }
  0x74   : > { %v862_v38 = vsub.f32 %v2427_v25, %v2272_v16  ;;  %v882_v49 = vadd.f32 %v877_v26, %v2413_v5  ;;  %v883_v33 = vadd.f32 %v879_v48, %v2409_v47  ;;  %v900_v51 = vmul.f32 0.007598758, %v897_v35 }
  0x75   : > { %v863_v50 = vsub.f32 %v2430_v28, %v2277_v29  ;;  %v901_v3 = vmul.f32 0.007598758, %v898_v54  ;;  %v902_v52 = vmul.f32 0.007598758, %v899_v1  ;;  %v917_v11 = vrot.slane %v2409_v47, 6 }
  0x76   : > { %v918_v53 = vrot.slane %v2417_v2, 6  ;;  %v944_v39 = vrot.slane %v2413_v5, 4  ;;  %v884_v0 = vmul.f32 0.0010283801, %v882_v49  ;;  %v885_v15 = vmul.f32 0.0010283801, %v883_v33 }
  0x77   : > { %v906_v40 = vrot.slane %v900_v51, 4  ;;  %v907_v37 = vrot.slane %v901_v3, 4  ;;  %v909_v60 = vrot.slane %v902_v52, 4  ;;  %v923_v61 = vadd.f32 %v917_v11, %v2413_v5 }
  0x78   : > { %v919_v43 = vsel %vm379_vm2, %v917_v11, %v918_v53  ;;  %v925_v20 = vadd.f32 %v918_v53, %v2417_v2  ;;  %v888_v24 = vrot.slane %v884_v0, 3  ;;  %v889_v9 = vrot.slane %v885_v15, 3 }
  0x79   : > { %v908_v45 = vsel %vm367_vm1, %v906_v40, %v907_v37  ;;  %v924_v31 = vadd.f32 %v919_v43, %v2409_v47  ;;  %v910_v18 = vsel %vm367_vm1, %v907_v37, %v909_v60  ;;  %v926_v21 = vmul.f32 0.036000773, %v923_v61 }
  0x7a   : > { %v928_v56 = vmul.f32 0.036000773, %v925_v20  ;;  %v945_v35 = vrot.slane %v2409_v47, 4  ;;  %v890_v54 = vsel %vm348_vm3, %v888_v24, %v889_v9  ;;  %v894_v1 = vadd.f32 %v888_v24, %v869_v55 }
  0x7b   : > { %v896_v48 = vadd.f32 %v889_v9, %v871_v58  ;;  %v927_v49 = vmul.f32 0.036000773, %v924_v31  ;;  %v895_v33 = vadd.f32 %v890_v54, %v870_v17  ;;  %v932_v51 = vrot.slane %v926_v21, 5 }
  0x7c   : > { %v935_v3 = vrot.slane %v928_v56, 5  ;;  %v946_v52 = vsel %vm367_vm1, %v944_v39, %v945_v35  ;;  %v914_v11 = vadd.f32 %v906_v40, %v894_v1  ;;  %v947_v15 = vrot.slane %v2417_v2, 4 }
  0x7d   : > { %v916_v53 = vadd.f32 %v910_v18, %v896_v48  ;;  %v933_v0 = vrot.slane %v927_v49, 5  ;;  %v915_v37 = vadd.f32 %v908_v45, %v895_v33  ;;  %v952_v60 = vadd.f32 %v946_v52, %v2413_v5 }
  0x7e   : > { %v972_v43 = vrot.slane %v2413_v5, 2  ;;  %v977_v61 = vadd.f32 %v877_v26, %v2409_v47  ;;  %v940_v58 = vadd.f32 %v932_v51, %v914_v11  ;;  %v948_v20 = vsel %vm367_vm1, %v945_v35, %v947_v15 }
  0x7f   : > { %v934_v55 = vsel %vm395_vm4, %v932_v51, %v933_v0  ;;  %v936_v17 = vsel %vm395_vm4, %v933_v0, %v935_v3  ;;  %v953_v24 = vadd.f32 %v948_v20, %v2409_v47  ;;  %v954_v9 = vadd.f32 %v947_v15, %v2417_v2 }
  0x80   : > { %v941_v39 = vadd.f32 %v934_v55, %v915_v37  ;;  %v942_v40 = vadd.f32 %v936_v17, %v916_v53  ;;  %v955_v45 = vmul.f32 0.10936069, %v952_v60  ;;  %v973_v31 = vsel %vm334_vm0, %v972_v43, %v875_v22 }
  0x81   : > { %v978_v26 = vadd.f32 %v876_v59, %v2417_v2  ;;  %v980_v18 = vmul.f32 0.21300554, %v977_v61  ;;  %v956_v21 = vmul.f32 0.10936069, %v953_v24  ;;  %v957_v56 = vmul.f32 0.10936069, %v954_v9 }
  0x82   : > { %v976_v54 = vadd.f32 %v973_v31, %v2413_v5  ;;  %v999_v35 = vmul.f32 2.0, %v2284_v42  ;;  %v961_v1 = vrot.slane %v955_v45, 6  ;;  %v1000_v33 = vmul.f32 2.0, %v2287_v44 }
  0x83   : > { %v981_v48 = vmul.f32 0.21300554, %v978_v26  ;;  %v986_v49 = vrot.slane %v980_v18, 7  ;;  %v864_v51 = vsub.f32 %v2434_v14, %v2281_v41  ;;  %v962_v47 = vrot.slane %v956_v21, 6 }
  0x84   : > { %v964_v3 = vrot.slane %v957_v56, 6  ;;  %v979_v22 = vmul.f32 0.21300554, %v976_v54  ;;  %v969_v52 = vadd.f32 %v961_v1, %v940_v58  ;;  %v1001_v59 = vmul.f32 2.0, %v2328_v30 }
  0x85   : > { %v988_v2 = vrot.slane %v981_v48, 7  ;;  %v1002_v11 = vadd.f32 0.0001, %v999_v35  ;;  %v963_v5 = vsel %vm379_vm2, %v961_v1, %v962_v47  ;;  %v1003_v15 = vadd.f32 0.0001, %v1000_v33 }
  0x86   : > { %v965_v53 = vsel %vm379_vm2, %v962_v47, %v964_v3  ;;  %v985_v0 = vrot.slane %v979_v22, 7  ;;  %v970_v37 = vadd.f32 %v963_v5, %v941_v39  ;;  %v1014_v14 = vadd.f32 %v2272_v16, %v2240_v62 }
  0x87   : > { %v971_v60 = vadd.f32 %v965_v53, %v942_v40  ;;  %v989_v43 = vsel %vm449_vm5, %v986_v49, %v988_v2  ;;  %v1015_v17 = vadd.f32 %v2277_v29, %v2244_v63  ;;  %v1016_v58 = vadd.f32 %v2281_v41, %v2248_v57 }
  0x88   : > { %v987_v61 = vsel %vm449_vm5, %v985_v0, %v986_v49  ;;  %v993_v55 = vadd.f32 %v985_v0, %v969_v52  ;;  %v1017_v9 = vadd.f32 0.0001, %v1014_v14  ;;  %v2971_v39 = vsub.f32 %v2354_v27, %v2240_v62 }
  0x89   : > { %v994_v20 = vadd.f32 %v987_v61, %v970_v37  ;;  %v995_v24 = vadd.f32 %v989_v43, %v971_v60  ;;  %v1018_v31 = vadd.f32 0.0001, %v1015_v17  ;;  %v1019_v26 = vadd.f32 0.0001, %v1016_v58 }
  0x8a   : > { %v1020_v40 = vadd.f32 %v862_v38, %v2971_v39  ;;  %v996_v45 = vsub.f32 %v993_v55, %v2284_v42  ;;  %v1021_v41 = vadd.f32 %v863_v50, %v729_v36  ;;  %v2972_v62 = vsub.f32 %v2356_v34, %v2248_v57 }
  0x8b   : > { %v997_v18 = vsub.f32 %v994_v20, %v2287_v44  ;;  %v998_v21 = vsub.f32 %v995_v24, %v2328_v30  ;;  %v1004_v25 = vadd.f32 0.0001, %v1001_v59  ;;  %v2512_v56 = vmul.f32 %v2086_v8, %v2080_v4 }
  0x8c   : > { %v1022_v16 = vadd.f32 %v864_v51, %v2972_v62  ;;  %v1023_v27 = vadd.f32 0.0009, %v1020_v40  ;;  %v1005_v42 = vmul.f32 2.0, %v996_v45  ;;  %v1024_v38 = vadd.f32 0.0009, %v1021_v41 }
  0x8d   : > { %v1006_v63 = vmul.f32 2.0, %v997_v18  ;;  %v1007_v46 = vmul.f32 2.0, %v998_v21  ;;  %v2520_v57 = vmul.f32 %v2082_v6, %v2093_v12  ;;  %v2524_v30 = vmul.f32 %v2084_v7, %v2096_v13 }
  0x8e   : > { %v1025_v29 = vadd.f32 0.0009, %v1022_v16  ;;  %v2514_v36 = vmul.f32 %v1023_v27, %v1017_v9  ;;  %v1008_v44 = vadd.f32 0.0009, %v1005_v42  ;;  %v2516_v28 = vmul.f32 %v1024_v38, %v1018_v31 }
  0x8f   : > { %v1009_v34 = vadd.f32 0.0009, %v1006_v63  ;;  %v1010_v50 = vadd.f32 0.0009, %v1007_v46  ;;  %v2534_v35 = vmul.f32 %v2086_v8, %v2162_v32  ;;  %v1074_v6 = vmul.f32 0.26601171, %v2088_v10 }
  0x90   : > { %v2526_v4 = vmul.f32 %v1025_v29, %v1019_v26  ;;  %1986 = vrcp.f32 %v2514_v36  ;;  %v2529_v54 = vmul.f32 %v1008_v44, %v1002_v11  ;;  %v1075_v13 = vmul.f32 0.26601171, %v2106_v19 }
  0x91   : > { %1988 = vrcp.f32 %v2516_v28  ;;  %v2537_v12 = vmul.f32 %v1009_v34, %v1003_v15  ;;  %v2539_v7 = vmul.f32 %v1010_v50, %v1004_v25  ;;  %v1076_v1 = vmul.f32 0.26601171, %v2118_v23 }
  0x92   : > { %1990 = vrcp.f32 %v2526_v4  ;;  %v1080_v48 = vrot.slane %v2106_v19, 2  ;;  %v2546_v49 = vrot.slane %v2118_v23, 2  ;;  %v1083_v8 = vrot.slane %v2512_v56, 2 }
  0x93   : > { %v1102_v32 = vadd.f32 %v2106_v19, %v2088_v10  ;;  %v1103_v33 = vadd.f32 %v2118_v23, %v2106_v19  ;;  %v1104_v51 = vadd.f32 %v2512_v56, %v2118_v23  ;;  %v1122_v47 = vrot.slane %v2106_v19, 6 }
  0x94   : > { %v2560_v3 = vsel %vm334_vm0, %v1080_v48, %v2546_v49  ;;  %v1084_v22 = vsel %vm334_vm0, %v2546_v49, %v1083_v8  ;;  %v1123_v52 = vrot.slane %v2118_v23, 6  ;;  %v1149_v2 = vrot.slane %v2088_v10, 4 }
  0x95   : > { %v1087_v59 = vadd.f32 %v2560_v3, %v2088_v10  ;;  %v1088_v11 = vadd.f32 %v1084_v22, %v2106_v19  ;;  %v1105_v5 = vmul.f32 0.007598758, %v1102_v32  ;;  %v1106_v53 = vmul.f32 0.007598758, %v1103_v33 }
  0x96   : > { %v1107_v0 = vmul.f32 0.007598758, %v1104_v51  ;;  %v1124_v15 = vsel %vm379_vm2, %v1122_v47, %v1123_v52  ;;  %v1128_v37 = vadd.f32 %v1122_v47, %v2088_v10  ;;  %v1130_v60 = vadd.f32 %v1123_v52, %v2118_v23 }
  0x97   : > { %v1089_v43 = vmul.f32 0.0010283801, %v1087_v59  ;;  %v1090_v14 = vmul.f32 0.0010283801, %v1088_v11  ;;  %v1111_v61 = vrot.slane %v1105_v5, 4  ;;  %v1112_v55 = vrot.slane %v1106_v53, 4 }
  0x98   : > { %v1114_v17 = vrot.slane %v1107_v0, 4  ;;  %v1129_v58 = vadd.f32 %v1124_v15, %v2106_v19  ;;  %v1131_v20 = vmul.f32 0.036000773, %v1128_v37  ;;  %v1133_v24 = vmul.f32 0.036000773, %v1130_v60 }
  0x99   : > { %v1093_v9 = vrot.slane %v1089_v43, 3  ;;  %v1094_v39 = vrot.slane %v1090_v14, 3  ;;  %v1113_v40 = vsel %vm367_vm1, %v1111_v61, %v1112_v55  ;;  %v1150_v45 = vrot.slane %v2106_v19, 4 }
  0x9a   : > { %v1115_v31 = vsel %vm367_vm1, %v1112_v55, %v1114_v17  ;;  %v1132_v26 = vmul.f32 0.036000773, %v1129_v58  ;;  %v1137_v41 = vrot.slane %v1131_v20, 5  ;;  %v1140_v18 = vrot.slane %v1133_v24, 5 }
  0x9b   : > { %v1095_v21 = vsel %vm348_vm3, %v1093_v9, %v1094_v39  ;;  %v1099_v62 = vadd.f32 %v1093_v9, %v1074_v6  ;;  %v1101_v16 = vadd.f32 %v1094_v39, %v1076_v1  ;;  %v1151_v27 = vsel %vm367_vm1, %v1149_v2, %v1150_v45 }
  0x9c   : > { %v1100_v42 = vadd.f32 %v1095_v21, %v1075_v13  ;;  %v1138_v38 = vrot.slane %v1132_v26, 5  ;;  %v1152_v63 = vrot.slane %v2118_v23, 4  ;;  %v1157_v46 = vadd.f32 %v1151_v27, %v2088_v10 }
  0x9d   : > { %v1987_v25 = vpop.eup %1986  ;;  %v1119_v34 = vadd.f32 %v1111_v61, %v1099_v62  ;;  %v1121_v50 = vadd.f32 %v1115_v31, %v1101_v16  ;;  %v1177_v8 = vrot.slane %v2088_v10, 2  ;;  %v1182_v60 = vadd.f32 %v2560_v3, %v2106_v19 }
  0x9e   : > { %v1989_v29 = vpop.eup %1988  ;;  %v1032_v44 = vmul.f32 %v1987_v25, %v2514_v36  ;;  %v1120_v1 = vadd.f32 %v1113_v40, %v1100_v42  ;;  %v1139_v33 = vsel %vm395_vm4, %v1137_v41, %v1138_v38  ;;  %v1141_v13 = vsel %vm395_vm4, %v1138_v38, %v1140_v18 }
  0x9f   : > { %v1991_v32 = vpop.eup %1990  ;;  %v1033_v6 = vmul.f32 %v1989_v29, %v2516_v28  ;;  %v1145_v22 = vadd.f32 %v1137_v41, %v1119_v34  ;;  %v1147_v52 = vadd.f32 %v1141_v13, %v1121_v50  ;;  %v1153_v59 = vsel %vm367_vm1, %v1150_v45, %v1152_v63 }
  0xa0   : > { %v1034_v51 = vmul.f32 %v1991_v32, %v2526_v4  ;;  %v1035_v47 = vsub.f32 2.0, %v1032_v44  ;;  %v1146_v36 = vadd.f32 %v1139_v33, %v1120_v1  ;;  %v1159_v11 = vadd.f32 %v1152_v63, %v2118_v23 }
  0xa1   : > { %v1036_v2 = vsub.f32 2.0, %v1033_v6  ;;  %v1158_v28 = vadd.f32 %v1153_v59, %v2106_v19  ;;  %v1160_v0 = vmul.f32 0.10936069, %v1157_v46  ;;  %v1178_v4 = vsel %vm334_vm0, %v1177_v8, %v1080_v48  ;;  %v2973_v46 = vld [vmem:[#allocation2_spill] sm:$0xff] }
  0xa2   : > { %v1037_v5 = vsub.f32 2.0, %v1034_v51  ;;  %v1038_v53 = vmul.f32 %v1987_v25, %v1035_v47  ;;  %v1162_v37 = vmul.f32 0.10936069, %v1159_v11  ;;  %v1181_v20 = vadd.f32 %v1178_v4, %v2088_v10 }
  0xa3   : > { %v1039_v15 = vmul.f32 %v1989_v29, %v1036_v2  ;;  %v1161_v61 = vmul.f32 0.10936069, %v1158_v28  ;;  %v1166_v55 = vrot.slane %v1160_v0, 6  ;;  %v1183_v24 = vadd.f32 %v2546_v49, %v2118_v23 }
  0xa4   : > { %v1040_v43 = vmul.f32 %v1991_v32, %v1037_v5  ;;  %v1041_v14 = vmul.f32 %v1038_v53, %v2529_v54  ;;  %v1169_v58 = vrot.slane %v1162_v37, 6  ;;  %v1184_v3 = vmul.f32 0.21300554, %v1181_v20 }
  0xa5   : > { %v1042_v17 = vmul.f32 %v1039_v15, %v2537_v12  ;;  %v1167_v48 = vrot.slane %v1161_v61, 6  ;;  %v1174_v40 = vadd.f32 %v1166_v55, %v1145_v22  ;;  %v1185_v31 = vmul.f32 0.21300554, %v1182_v60 }
  0xa6   : > { %v1043_v9 = vmul.f32 %v1040_v43, %v2539_v7  ;;  %v1047_v39 = vrot.slane %v1041_v14, 5  ;;  %v1207_v54 = vrot.slane %v2520_v57, 2  ;;  %v1186_v18 = vmul.f32 0.21300554, %v1183_v24 }
  0xa7   : > { %v1048_v45 = vrot.slane %v1042_v17, 5  ;;  %v1168_v41 = vsel %vm379_vm2, %v1166_v55, %v1167_v48  ;;  %v1170_v12 = vsel %vm379_vm2, %v1167_v48, %v1169_v58  ;;  %v1190_v16 = vrot.slane %v1184_v3, 7 }
  0xa8   : > { %v1050_v26 = vrot.slane %v1043_v9, 5  ;;  %v1175_v62 = vadd.f32 %v1168_v41, %v1146_v36  ;;  %v1176_v49 = vadd.f32 %v1170_v12, %v1147_v52  ;;  %v1191_v25 = vrot.slane %v1185_v31, 7 }
  0xa9   : > { %v1049_v21 = vsel %vm395_vm4, %v1047_v39, %v1048_v45  ;;  %v1193_v42 = vrot.slane %v1186_v18, 7  ;;  %v2607_v63 = vadd.f32 %v1190_v16, %v1174_v40  ;;  %v1201_v29 = vmul.f32 0.26601171, %v2973_v46 }
  0xaa   : > { %v1051_v7 = vsel %vm395_vm4, %v1048_v45, %v1050_v26  ;;  %v1055_v27 = vsel %vm1054_vm6, %v1049_v21, 0.0  ;;  %v1202_v44 = vmul.f32 0.26601171, %v2520_v57  ;;  %v1192_v50 = vsel %vm449_vm5, %v1190_v16, %v1191_v25 }
  0xab   : > { %v1056_v38 = vsel %vm1054_vm6, %v1051_v7, 0.0  ;;  %v1194_v8 = vsel %vm449_vm5, %v1191_v25, %v1193_v42  ;;  %v1203_v32 = vmul.f32 0.26601171, %v2524_v30  ;;  %v2614_v6 = vadd.f32 %v1192_v50, %v1175_v62 }
  0xac   : > { %v1057_v34 = vadd.f32 %v1056_v38, %v1055_v27  ;;  %v2616_v1 = vadd.f32 %v1194_v8, %v1176_v49  ;;  %v1208_v33 = vrot.slane %v2524_v30, 2  ;;  %v1210_v13 = vrot.slane %v2534_v35, 2 }
  0xad   : > { %v1229_v47 = vadd.f32 %v2520_v57, %v2973_v46  ;;  %v1230_v22 = vadd.f32 %v2524_v30, %v2520_v57  ;;  %v1231_v52 = vadd.f32 %v2534_v35, %v2524_v30  ;;  %v1249_v59 = vrot.slane %v2520_v57, 6 }
  0xae   : > { %v1058_v51 = vrot.slane %v1057_v34, 4  ;;  %v1209_v2 = vsel %vm334_vm0, %v1207_v54, %v1208_v33  ;;  %v1211_v36 = vsel %vm334_vm0, %v1208_v33, %v1210_v13  ;;  %v1250_v11 = vrot.slane %v2524_v30, 6 }
  0xaf   : > { %v1214_v53 = vadd.f32 %v1209_v2, %v2973_v46  ;;  %v1215_v28 = vadd.f32 %v1211_v36, %v2520_v57  ;;  %v1232_v0 = vmul.f32 0.007598758, %v1229_v47  ;;  %v1233_v15 = vmul.f32 0.007598758, %v1230_v22 }
  0xb0   : > { %v1059_v5 = vadd.f32 %v1058_v51, %v1057_v34  ;;  %v1234_v37 = vmul.f32 0.007598758, %v1231_v52  ;;  %v1251_v4 = vsel %vm379_vm2, %v1249_v59, %v1250_v11  ;;  %v1255_v60 = vadd.f32 %v1249_v59, %v2973_v46 }
  0xb1   : > { %v1216_v14 = vmul.f32 0.0010283801, %v1214_v53  ;;  %v1217_v61 = vmul.f32 0.0010283801, %v1215_v28  ;;  %v1238_v55 = vrot.slane %v1232_v0, 4  ;;  %v1239_v17 = vrot.slane %v1233_v15, 4 }
  0xb2   : > { %v1060_v43 = vrot.slane %v1059_v5, 2  ;;  %v1241_v58 = vrot.slane %v1234_v37, 4  ;;  %v1256_v20 = vadd.f32 %v1251_v4, %v2520_v57  ;;  %v1257_v24 = vadd.f32 %v1250_v11, %v2524_v30 }
  0xb3   : > { %v1220_v39 = vrot.slane %v1216_v14, 3  ;;  %v1221_v48 = vrot.slane %v1217_v61, 3  ;;  %v1258_v40 = vmul.f32 0.036000773, %v1255_v60  ;;  %v1240_v45 = vsel %vm367_vm1, %v1238_v55, %v1239_v17 }
  0xb4   : > { %v1061_v9 = vadd.f32 %v1060_v43, %v1059_v5  ;;  %v1242_v3 = vsel %vm367_vm1, %v1239_v17, %v1241_v58  ;;  %v1259_v31 = vmul.f32 0.036000773, %v1256_v20  ;;  %v1260_v26 = vmul.f32 0.036000773, %v1257_v24 }
  0xb5   : > { %v1222_v12 = vsel %vm348_vm3, %v1220_v39, %v1221_v48  ;;  %v1226_v18 = vadd.f32 %v1220_v39, %v1201_v29  ;;  %v1228_v21 = vadd.f32 %v1221_v48, %v1203_v32  ;;  %v1264_v49 = vrot.slane %v1258_v40, 5 }
  0xb6   : > { %v1062_v41 = vrot.slane %v1061_v9, 1  ;;  %v1227_v62 = vadd.f32 %v1222_v12, %v1202_v44  ;;  %v1265_v16 = vrot.slane %v1259_v31, 5  ;;  %v1267_v7 = vrot.slane %v1260_v26, 5 }
  0xb7   : > { %v1276_v25 = vrot.slane %v2973_v46, 4  ;;  %v1246_v42 = vadd.f32 %v1238_v55, %v1226_v18  ;;  %v1248_v38 = vadd.f32 %v1242_v3, %v1228_v21  ;;  %v1277_v34 = vrot.slane %v2520_v57, 4 }
  0xb8   : > { %v1063_v27 = vadd.f32 %v1062_v41, %v1061_v9  ;;  %v1247_v50 = vadd.f32 %v1240_v45, %v1227_v62  ;;  %v1266_v29 = vsel %vm395_vm4, %v1264_v49, %v1265_v16  ;;  %v1279_v8 = vrot.slane %v2524_v30, 4 }
  0xb9   : > { %v1304_v32 = vrot.slane %v2973_v46, 2  ;;  %v1268_v44 = vsel %vm395_vm4, %v1265_v16, %v1267_v7  ;;  %v1278_v13 = vsel %vm367_vm1, %v1276_v25, %v1277_v34  ;;  %v1309_v51 = vadd.f32 %v1209_v2, %v2520_v57 }
  0xba   : > { %1065 = vst.msk [vmem:[%s297_s5] sm:$0x1] %vm1064_vm7, %v1063_v27  ;;  %v1310_v47 = vadd.f32 %v1208_v33, %v2524_v30  ;;  %v1280_v22 = vsel %vm367_vm1, %v1277_v34, %v1279_v8  ;;  %v1284_v52 = vadd.f32 %v1278_v13, %v2973_v46  ;;  %v1286_v36 = vadd.f32 %v1279_v8, %v2524_v30 }
  0xbb   : > { %v1305_v59 = vsel %vm334_vm0, %v1304_v32, %v1207_v54  ;;  %v1285_v11 = vadd.f32 %v1280_v22, %v2520_v57  ;;  %v1312_v53 = vmul.f32 0.21300554, %v1309_v51  ;;  %v1272_v0 = vadd.f32 %v1264_v49, %v1246_v42 }
  0xbc   : > { %v1308_v5 = vadd.f32 %v1305_v59, %v2973_v46  ;;  %v1313_v28 = vmul.f32 0.21300554, %v1310_v47  ;;  %v1274_v2 = vadd.f32 %v1268_v44, %v1248_v38  ;;  %v1287_v15 = vmul.f32 0.10936069, %v1284_v52 }
  0xbd   : > { %v1289_v33 = vmul.f32 0.10936069, %v1286_v36  ;;  %v1273_v37 = vadd.f32 %v1266_v29, %v1247_v50  ;;  %v1288_v4 = vmul.f32 0.10936069, %v1285_v11  ;;  %v1318_v43 = vrot.slane %v1312_v53, 7 }
  0xbe   : > { %v1311_v60 = vmul.f32 0.21300554, %v1308_v5  ;;  %v1293_v14 = vrot.slane %v1287_v15, 6  ;;  %v1320_v55 = vrot.slane %v1313_v28, 7  ;;  %v2665_v54 = vmul.f32 %v2607_v63, %v2607_v63 }
  0xbf   : > { %v1296_v61 = vrot.slane %v1289_v33, 6  ;;  %v1294_v17 = vrot.slane %v1288_v4, 6  ;;  %v2669_v20 = vmul.f32 %v2614_v6, %v2614_v6  ;;  %v2673_v24 = vmul.f32 %v2106_v19, %v2106_v19 }
  0xc0   : > { %v1317_v58 = vrot.slane %v1311_v60, 7  ;;  %v1301_v9 = vadd.f32 %v1293_v14, %v1272_v0  ;;  %v2677_v39 = vmul.f32 %v2616_v1, %v2616_v1  ;;  %v2681_v48 = vmul.f32 %v2118_v23, %v2118_v23 }
  0xc1   : > { %v1340_v40 = vmul.f32 %v2512_v56, %v2512_v56  ;;  %v1295_v45 = vsel %vm379_vm2, %v1293_v14, %v1294_v17  ;;  %v1297_v3 = vsel %vm379_vm2, %v1294_v17, %v1296_v61  ;;  %v2690_v26 = vmul.f32 %v2088_v10, %v2088_v10 }
  0xc2   : > { %v1319_v31 = vsel %vm449_vm5, %v1317_v58, %v1318_v43  ;;  %v1302_v41 = vadd.f32 %v1295_v45, %v1273_v37  ;;  %v1303_v12 = vadd.f32 %v1297_v3, %v1274_v2  ;;  %v1321_v18 = vsel %vm449_vm5, %v1318_v43, %v1320_v55 }
  0xc3   : > { %v1325_v21 = vadd.f32 %v1317_v58, %v1301_v9  ;;  %v1347_v62 = vrot.slane %v2673_v24, 2  ;;  %v2695_v49 = vrot.slane %v2681_v48, 2  ;;  %v1350_v16 = vrot.slane %v1340_v40, 2 }
  0xc4   : > { %v1369_v7 = vadd.f32 %v2673_v24, %v2690_v26  ;;  %v2699_v27 = vadd.f32 %v1319_v31, %v1302_v41  ;;  %v1341_v42 = vmul.f32 0.26601171, %v2690_v26  ;;  %v1342_v38 = vmul.f32 0.26601171, %v2673_v24 }
  0xc5   : > { %v2702_v25 = vmul.f32 %v1325_v21, %v2607_v63  ;;  %v1349_v34 = vsel %vm334_vm0, %v1347_v62, %v2695_v49  ;;  %v1351_v50 = vsel %vm334_vm0, %v2695_v49, %v1350_v16  ;;  %v1370_v29 = vadd.f32 %v2681_v48, %v2673_v24 }
  0xc6   : > { %v1371_v8 = vadd.f32 %v1340_v40, %v2681_v48  ;;  %v2715_v32 = vadd.f32 %v1321_v18, %v1303_v12  ;;  %v2717_v63 = vmul.f32 %v1325_v21, %v1325_v21  ;;  %v2721_v44 = vmul.f32 %v2699_v27, %v2614_v6 }
  0xc7   : > { %v1343_v13 = vmul.f32 0.26601171, %v2681_v48  ;;  %v1354_v51 = vadd.f32 %v1349_v34, %v2690_v26  ;;  %v1355_v47 = vadd.f32 %v1351_v50, %v2673_v24  ;;  %v1372_v22 = vmul.f32 0.007598758, %v1369_v7 }
  0xc8   : > { %v1373_v52 = vmul.f32 0.007598758, %v1370_v29  ;;  %v1374_v36 = vmul.f32 0.007598758, %v1371_v8  ;;  %v1389_v59 = vrot.slane %v2673_v24, 6  ;;  %v1390_v11 = vrot.slane %v2681_v48, 6 }
  0xc9   : > { %v1416_v5 = vrot.slane %v2690_v26, 4  ;;  %v1356_v53 = vmul.f32 0.0010283801, %v1354_v51  ;;  %v1357_v28 = vmul.f32 0.0010283801, %v1355_v47  ;;  %v1378_v0 = vrot.slane %v1372_v22, 4 }
  0xca   : > { %v1379_v6 = vrot.slane %v1373_v52, 4  ;;  %v1381_v2 = vrot.slane %v1374_v36, 4  ;;  %v1391_v15 = vsel %vm379_vm2, %v1389_v59, %v1390_v11  ;;  %v1395_v33 = vadd.f32 %v1389_v59, %v2690_v26 }
  0xcb   : > { %v1397_v37 = vadd.f32 %v1390_v11, %v2681_v48  ;;  %v1360_v4 = vrot.slane %v1356_v53, 3  ;;  %v1361_v60 = vrot.slane %v1357_v28, 3  ;;  %v1396_v14 = vadd.f32 %v1391_v15, %v2673_v24 }
  0xcc   : > { %v1380_v43 = vsel %vm367_vm1, %v1378_v0, %v1379_v6  ;;  %v1382_v61 = vsel %vm367_vm1, %v1379_v6, %v1381_v2  ;;  %v1398_v55 = vmul.f32 0.036000773, %v1395_v33  ;;  %v1417_v58 = vrot.slane %v2673_v24, 4 }
  0xcd   : > { %v1400_v17 = vmul.f32 0.036000773, %v1397_v37  ;;  %v1362_v9 = vsel %vm348_vm3, %v1360_v4, %v1361_v60  ;;  %v1366_v40 = vadd.f32 %v1360_v4, %v1341_v42  ;;  %v1368_v45 = vadd.f32 %v1361_v60, %v1343_v13 }
  0xce   : > { %v1399_v3 = vmul.f32 0.036000773, %v1396_v14  ;;  %v1367_v31 = vadd.f32 %v1362_v9, %v1342_v38  ;;  %v1404_v41 = vrot.slane %v1398_v55, 5  ;;  %v1418_v18 = vsel %vm367_vm1, %v1416_v5, %v1417_v58 }
  0xcf   : > { %v1407_v12 = vrot.slane %v1400_v17, 5  ;;  %v1386_v21 = vadd.f32 %v1378_v0, %v1366_v40  ;;  %v1388_v16 = vadd.f32 %v1382_v61, %v1368_v45  ;;  %v1419_v50 = vrot.slane %v2681_v48, 4 }
  0xd0   : > { %v1405_v7 = vrot.slane %v1399_v3, 5  ;;  %v1387_v29 = vadd.f32 %v1380_v43, %v1367_v31  ;;  %v1424_v8 = vadd.f32 %v1418_v18, %v2690_v26  ;;  %v1444_v51 = vrot.slane %v2690_v26, 2 }
  0xd1   : > { %v1449_v47 = vadd.f32 %v1349_v34, %v2673_v24  ;;  %v1412_v13 = vadd.f32 %v1404_v41, %v1386_v21  ;;  %v1420_v22 = vsel %vm367_vm1, %v1417_v58, %v1419_v50  ;;  %v1426_v11 = vadd.f32 %v1419_v50, %v2681_v48 }
  0xd2   : > { %v1406_v42 = vsel %vm395_vm4, %v1404_v41, %v1405_v7  ;;  %v1408_v38 = vsel %vm395_vm4, %v1405_v7, %v1407_v12  ;;  %v1425_v59 = vadd.f32 %v1420_v22, %v2673_v24  ;;  %v1427_v5 = vmul.f32 0.10936069, %v1424_v8 }
  0xd3   : > { %v1413_v52 = vadd.f32 %v1406_v42, %v1387_v29  ;;  %v1414_v36 = vadd.f32 %v1408_v38, %v1388_v16  ;;  %v1445_v53 = vsel %vm334_vm0, %v1444_v51, %v1347_v62  ;;  %v1450_v34 = vadd.f32 %v2695_v49, %v2681_v48 }
  0xd4   : > { %v1452_v28 = vmul.f32 0.21300554, %v1449_v47  ;;  %v1428_v0 = vmul.f32 0.10936069, %v1425_v59  ;;  %v1429_v6 = vmul.f32 0.10936069, %v1426_v11  ;;  %v1448_v2 = vadd.f32 %v1445_v53, %v2690_v26 }
  0xd5   : > { %v2755_v15 = vmul.f32 %v2973_v46, %v2973_v46  ;;  %v1433_v33 = vrot.slane %v1427_v5, 6  ;;  %v1453_v37 = vmul.f32 0.21300554, %v1450_v34  ;;  %v2759_v24 = vmul.f32 %v2520_v57, %v2520_v57 }
  0xd6   : > { %v1458_v4 = vrot.slane %v1452_v28, 7  ;;  %v1434_v62 = vrot.slane %v1428_v0, 6  ;;  %v1436_v60 = vrot.slane %v1429_v6, 6  ;;  %v1451_v43 = vmul.f32 0.21300554, %v1448_v2 }
  0xd7   : > { %v2763_v48 = vmul.f32 %v2524_v30, %v2524_v30  ;;  %v1441_v49 = vadd.f32 %v1433_v33, %v1412_v13  ;;  %v1460_v26 = vrot.slane %v1453_v37, 7  ;;  %v1474_v14 = vmul.f32 %v2534_v35, %v2534_v35 }
  0xd8   : > { %v1475_v61 = vmul.f32 0.26601171, %v2755_v15  ;;  %v1435_v55 = vsel %vm379_vm2, %v1433_v33, %v1434_v62  ;;  %v1437_v17 = vsel %vm379_vm2, %v1434_v62, %v1436_v60  ;;  %v1457_v58 = vrot.slane %v1451_v43, 7 }
  0xd9   : > { %v1476_v9 = vmul.f32 0.26601171, %v2759_v24  ;;  %v1442_v40 = vadd.f32 %v1435_v55, %v1413_v52  ;;  %v1443_v45 = vadd.f32 %v1437_v17, %v1414_v36  ;;  %v1461_v3 = vsel %vm449_vm5, %v1458_v4, %v1460_v26 }
  0xda   : > { %v1477_v31 = vmul.f32 0.26601171, %v2763_v48  ;;  %v1459_v41 = vsel %vm449_vm5, %v1457_v58, %v1458_v4  ;;  %v2774_v12 = vadd.f32 %v1457_v58, %v1441_v49  ;;  %v1481_v18 = vrot.slane %v2759_v24, 2 }
  0xdb   : > { %v2778_v21 = vrot.slane %v2763_v48, 2  ;;  %v2780_v16 = vadd.f32 %v1459_v41, %v1442_v40  ;;  %v2782_v7 = vadd.f32 %v1461_v3, %v1443_v45  ;;  %v1484_v50 = vrot.slane %v1474_v14, 2 }
  0xdc   : > { %v1503_v29 = vadd.f32 %v2759_v24, %v2755_v15  ;;  %v1468_v8 = vsub.f32 %v2774_v12, %v2665_v54  ;;  %v1504_v47 = vadd.f32 %v2763_v48, %v2759_v24  ;;  %v1505_v42 = vadd.f32 %v1474_v14, %v2763_v48 }
  0xdd   : > { %v1483_v51 = vsel %vm334_vm0, %v1481_v18, %v2778_v21  ;;  %v1469_v38 = vsub.f32 %v2780_v16, %v2669_v20  ;;  %v1470_v13 = vsub.f32 %v2782_v7, %v2677_v39  ;;  %v1485_v22 = vsel %vm334_vm0, %v2778_v21, %v1484_v50 }
  0xde   : > { %v1488_v52 = vadd.f32 %v1483_v51, %v2755_v15  ;;  %v1489_v36 = vadd.f32 %v1485_v22, %v2759_v24  ;;  %v1506_v59 = vmul.f32 0.007598758, %v1503_v29  ;;  %v1507_v11 = vmul.f32 0.007598758, %v1504_v47 }
  0xdf   : > { %v1508_v5 = vmul.f32 0.007598758, %v1505_v42  ;;  %v1523_v34 = vrot.slane %v2759_v24, 6  ;;  %v1524_v28 = vrot.slane %v2763_v48, 6  ;;  %v1550_v0 = vrot.slane %v2755_v15, 4 }
  0xe0   : > { %v1490_v53 = vmul.f32 0.0010283801, %v1488_v52  ;;  %v1491_v6 = vmul.f32 0.0010283801, %v1489_v36  ;;  %v1512_v2 = vrot.slane %v1506_v59, 4  ;;  %v1513_v33 = vrot.slane %v1507_v11, 4 }
  0xe1   : > { %v1515_v37 = vrot.slane %v1508_v5, 4  ;;  %v1525_v62 = vsel %vm379_vm2, %v1523_v34, %v1524_v28  ;;  %v1529_v60 = vadd.f32 %v1523_v34, %v2755_v15  ;;  %v1531_v43 = vadd.f32 %v1524_v28, %v2763_v48 }
  0xe2   : > { %v1494_v4 = vrot.slane %v1490_v53, 3  ;;  %v1495_v49 = vrot.slane %v1491_v6, 3  ;;  %v1514_v26 = vsel %vm367_vm1, %v1512_v2, %v1513_v33  ;;  %v1530_v55 = vadd.f32 %v1525_v62, %v2759_v24 }
  0xe3   : > { %v1516_v14 = vsel %vm367_vm1, %v1513_v33, %v1515_v37  ;;  %v1532_v58 = vmul.f32 0.036000773, %v1529_v60  ;;  %v1534_v40 = vmul.f32 0.036000773, %v1531_v43  ;;  %v1551_v45 = vrot.slane %v2759_v24, 4 }
  0xe4   : > { %v1500_v17 = vadd.f32 %v1494_v4, %v1475_v61  ;;  %v1496_v3 = vsel %vm348_vm3, %v1494_v4, %v1495_v49  ;;  %v1502_v41 = vadd.f32 %v1495_v49, %v1477_v31  ;;  %v1533_v50 = vmul.f32 0.036000773, %v1530_v55 }
  0xe5   : > { %v1553_v29 = vrot.slane %v2763_v48, 4  ;;  %v1501_v47 = vadd.f32 %v1496_v3, %v1476_v9  ;;  %v1538_v22 = vrot.slane %v1532_v58, 5  ;;  %v1541_v52 = vrot.slane %v1534_v40, 5 }
  0xe6   : > { %v1520_v42 = vadd.f32 %v1512_v2, %v1500_v17  ;;  %v1522_v36 = vadd.f32 %v1516_v14, %v1502_v41  ;;  %v1539_v59 = vrot.slane %v1533_v50, 5  ;;  %v1552_v11 = vsel %vm367_vm1, %v1550_v0, %v1551_v45 }
  0xe7   : > { %v1554_v61 = vsel %vm367_vm1, %v1551_v45, %v1553_v29  ;;  %v1521_v5 = vadd.f32 %v1514_v26, %v1501_v47  ;;  %v1558_v34 = vadd.f32 %v1552_v11, %v2755_v15  ;;  %v1560_v9 = vadd.f32 %v1553_v29, %v2763_v48 }
  0xe8   : > { %v1546_v53 = vadd.f32 %v1538_v22, %v1520_v42  ;;  %v1559_v28 = vadd.f32 %v1554_v61, %v2759_v24  ;;  %v1540_v31 = vsel %vm395_vm4, %v1538_v22, %v1539_v59  ;;  %v1542_v6 = vsel %vm395_vm4, %v1539_v59, %v1541_v52 }
  0xe9   : > { %v1578_v2 = vrot.slane %v2755_v15, 2  ;;  %v1547_v33 = vadd.f32 %v1540_v31, %v1521_v5  ;;  %v1548_v37 = vadd.f32 %v1542_v6, %v1522_v36  ;;  %v1561_v4 = vmul.f32 0.10936069, %v1558_v34 }
  0xea   : > { %v1562_v0 = vmul.f32 0.10936069, %v1559_v28  ;;  %v1563_v62 = vmul.f32 0.10936069, %v1560_v9  ;;  %v1583_v43 = vadd.f32 %v1483_v51, %v2759_v24  ;;  %v1584_v49 = vadd.f32 %v2778_v21, %v2763_v48 }
  0xeb   : > { %v1579_v60 = vsel %vm334_vm0, %v1578_v2, %v1481_v18  ;;  %v1567_v26 = vrot.slane %v1561_v4, 6  ;;  %v2832_v17 = vmul.f32 %v2973_v46, %v2088_v10  ;;  %v2836_v3 = vmul.f32 %v2520_v57, %v2106_v19 }
  0xec   : > { %v1568_v14 = vrot.slane %v1562_v0, 6  ;;  %v1582_v55 = vadd.f32 %v1579_v60, %v2755_v15  ;;  %v1570_v58 = vrot.slane %v1563_v62, 6  ;;  %v1586_v40 = vmul.f32 0.21300554, %v1583_v43 }
  0xed   : > { %v1587_v45 = vmul.f32 0.21300554, %v1584_v49  ;;  %v2840_v24 = vmul.f32 %v2699_v27, %v2699_v27  ;;  %v2845_v15 = vmul.f32 %v2524_v30, %v2118_v23  ;;  %v2849_v10 = vmul.f32 %v2715_v32, %v2715_v32 }
  0xee   : > { %v1569_v48 = vsel %vm379_vm2, %v1567_v26, %v1568_v14  ;;  %v1585_v18 = vmul.f32 0.21300554, %v1582_v55  ;;  %v1571_v46 = vsel %vm379_vm2, %v1568_v14, %v1570_v58  ;;  %v1592_v21 = vrot.slane %v1586_v40, 7 }
  0xef   : > { %v1594_v19 = vrot.slane %v1587_v45, 7  ;;  %v1575_v57 = vadd.f32 %v1567_v26, %v1546_v53  ;;  %v1577_v51 = vadd.f32 %v1571_v46, %v1548_v37  ;;  %v1608_v27 = vmul.f32 %v2534_v35, %v2512_v56 }
  0xf0   : > { %v1591_v41 = vrot.slane %v1585_v18, 7  ;;  %v2856_v50 = vmul.f32 %v2715_v32, %v2616_v1  ;;  %v1576_v23 = vadd.f32 %v1569_v48, %v1547_v33  ;;  %v1615_v29 = vrot.slane %v2836_v3, 2 }
  0xf1   : > { %v1595_v30 = vsel %vm449_vm5, %v1592_v21, %v1594_v19  ;;  %v1609_v42 = vmul.f32 0.26601171, %v2832_v17  ;;  %v1610_v22 = vmul.f32 0.26601171, %v2836_v3  ;;  %v2864_v52 = vrot.slane %v2845_v15, 2 }
  0xf2   : > { %v1593_v47 = vsel %vm449_vm5, %v1591_v41, %v1592_v21  ;;  %v1611_v56 = vmul.f32 0.26601171, %v2845_v15  ;;  %v1618_v35 = vrot.slane %v1608_v27, 2  ;;  %v1637_v1 = vadd.f32 %v2836_v3, %v2832_v17 }
  0xf3   : > { %v1638_v32 = vadd.f32 %v2845_v15, %v2836_v3  ;;  %v2871_v36 = vadd.f32 %v1591_v41, %v1575_v57  ;;  %v2873_v59 = vadd.f32 %v1595_v30, %v1577_v51  ;;  %v1617_v11 = vsel %vm334_vm0, %v1615_v29, %v2864_v52 }
  0xf4   : > { %v1639_v61 = vadd.f32 %v1608_v27, %v2845_v15  ;;  %v2880_v5 = vadd.f32 %v1593_v47, %v1576_v23  ;;  %v1619_v53 = vsel %vm334_vm0, %v2864_v52, %v1618_v35  ;;  %v1622_v34 = vadd.f32 %v1617_v11, %v2832_v17 }
  0xf5   : > { %v1640_v28 = vmul.f32 0.007598758, %v1637_v1  ;;  %v1623_v31 = vadd.f32 %v1619_v53, %v2836_v3  ;;  %v1641_v6 = vmul.f32 0.007598758, %v1638_v32  ;;  %v1657_v2 = vrot.slane %v2836_v3, 6 }
  0xf6   : > { %v1642_v9 = vmul.f32 0.007598758, %v1639_v61  ;;  %v1624_v33 = vmul.f32 0.0010283801, %v1622_v34  ;;  %v1658_v4 = vrot.slane %v2845_v15, 6  ;;  %v1684_v0 = vrot.slane %v2832_v17, 4 }
  0xf7   : > { %v1646_v37 = vrot.slane %v1640_v28, 4  ;;  %v1625_v62 = vmul.f32 0.0010283801, %v1623_v31  ;;  %v1647_v60 = vrot.slane %v1641_v6, 4  ;;  %v1663_v49 = vadd.f32 %v1657_v2, %v2832_v17 }
  0xf8   : > { %v1649_v43 = vrot.slane %v1642_v9, 4  ;;  %v1628_v26 = vrot.slane %v1624_v33, 3  ;;  %v1659_v14 = vsel %vm379_vm2, %v1657_v2, %v1658_v4  ;;  %v1665_v55 = vadd.f32 %v1658_v4, %v2845_v15 }
  0xf9   : > { %v1685_v58 = vrot.slane %v2836_v3, 4  ;;  %v1629_v40 = vrot.slane %v1625_v62, 3  ;;  %v1648_v45 = vsel %vm367_vm1, %v1646_v37, %v1647_v60  ;;  %v1664_v18 = vadd.f32 %v1659_v14, %v2836_v3 }
  0xfa   : > { %v1650_v48 = vsel %vm367_vm1, %v1647_v60, %v1649_v43  ;;  %v1634_v46 = vadd.f32 %v1628_v26, %v1609_v42  ;;  %v1666_v21 = vmul.f32 0.036000773, %v1663_v49  ;;  %v1668_v19 = vmul.f32 0.036000773, %v1665_v55 }
  0xfb   : > { %v1686_v57 = vsel %vm367_vm1, %v1684_v0, %v1685_v58  ;;  %v1630_v51 = vsel %vm348_vm3, %v1628_v26, %v1629_v40  ;;  %v1636_v41 = vadd.f32 %v1629_v40, %v1611_v56  ;;  %v1667_v27 = vmul.f32 0.036000773, %v1664_v18 }
  0xfc   : > { %v1687_v23 = vrot.slane %v2845_v15, 4  ;;  %v1635_v30 = vadd.f32 %v1630_v51, %v1610_v22  ;;  %v1654_v47 = vadd.f32 %v1646_v37, %v1634_v46  ;;  %v1672_v35 = vrot.slane %v1666_v21, 5 }
  0xfd   : > { %v1675_v1 = vrot.slane %v1668_v19, 5  ;;  %v1656_v32 = vadd.f32 %v1650_v48, %v1636_v41  ;;  %v1673_v61 = vrot.slane %v1667_v27, 5  ;;  %v1692_v42 = vadd.f32 %v1686_v57, %v2832_v17 }
  0xfe   : > { %v1688_v53 = vsel %vm367_vm1, %v1685_v58, %v1687_v23  ;;  %v1655_v34 = vadd.f32 %v1648_v45, %v1635_v30  ;;  %v1680_v28 = vadd.f32 %v1672_v35, %v1654_v47  ;;  %v1694_v6 = vadd.f32 %v1687_v23, %v2845_v15 }
  0xff   : > { %v1693_v31 = vadd.f32 %v1688_v53, %v2836_v3  ;;  %v1674_v56 = vsel %vm395_vm4, %v1672_v35, %v1673_v61  ;;  %v1676_v9 = vsel %vm395_vm4, %v1673_v61, %v1675_v1  ;;  %v1695_v22 = vmul.f32 0.10936069, %v1692_v42 }
 0x100   : > { %v1712_v2 = vrot.slane %v2832_v17, 2  ;;  %v1681_v33 = vadd.f32 %v1674_v56, %v1655_v34  ;;  %v1682_v37 = vadd.f32 %v1676_v9, %v1656_v32  ;;  %v1697_v0 = vmul.f32 0.10936069, %v1694_v6 }
 0x101   : > { %v1696_v4 = vmul.f32 0.10936069, %v1693_v31  ;;  %v1701_v62 = vrot.slane %v1695_v22, 6  ;;  %v1717_v43 = vadd.f32 %v1617_v11, %v2836_v3  ;;  %v1718_v49 = vadd.f32 %v2864_v52, %v2845_v15 }
 0x102   : > { %v1713_v60 = vsel %vm334_vm0, %v1712_v2, %v1615_v29  ;;  %v1602_v26 = vsub.f32 %v2871_v36, %v2717_v63  ;;  %v1704_v55 = vrot.slane %v1697_v0, 6  ;;  %v1604_v40 = vsub.f32 %v2873_v59, %v2849_v10 }
 0x103   : > { %v1702_v14 = vrot.slane %v1696_v4, 6  ;;  %v1716_v58 = vadd.f32 %v1713_v60, %v2832_v17  ;;  %v1709_v45 = vadd.f32 %v1701_v62, %v1680_v28  ;;  %v1720_v48 = vmul.f32 0.21300554, %v1717_v43 }
 0x104   : > { %v1721_v18 = vmul.f32 0.21300554, %v1718_v49  ;;  %v1603_v29 = vsub.f32 %v2880_v5, %v2840_v24  ;;  %v1739_v17 = vmul.f32 2.0, %v2702_v25  ;;  %v1740_v59 = vmul.f32 2.0, %v2721_v44 }
 0x105   : > { %v1703_v3 = vsel %vm379_vm2, %v1701_v62, %v1702_v14  ;;  %v1705_v15 = vsel %vm379_vm2, %v1702_v14, %v1704_v55  ;;  %v1719_v52 = vmul.f32 0.21300554, %v1716_v58  ;;  %v1726_v46 = vrot.slane %v1720_v48, 7 }
 0x106   : > { %v1710_v11 = vadd.f32 %v1703_v3, %v1681_v33  ;;  %v1711_v36 = vadd.f32 %v1705_v15, %v1682_v37  ;;  %v1728_v21 = vrot.slane %v1721_v18, 7  ;;  %v1754_v57 = vadd.f32 %v2717_v63, %v2665_v54 }
 0x107   : > { %v1725_v19 = vrot.slane %v1719_v52, 7  ;;  %v1741_v5 = vmul.f32 2.0, %v2856_v50  ;;  %v1755_v41 = vadd.f32 %v2840_v24, %v2669_v20  ;;  %v1756_v27 = vadd.f32 %v2849_v10, %v2677_v39 }
 0x108   : > { %v1729_v51 = vsel %vm449_vm5, %v1726_v46, %v1728_v21  ;;  %v1757_v35 = vadd.f32 0.0001, %v1754_v57  ;;  %v1760_v63 = vadd.f32 %v1602_v26, %v1468_v8  ;;  %v1761_v24 = vadd.f32 %v1603_v29, %v1469_v38 }
 0x109   : > { %v1727_v23 = vsel %vm449_vm5, %v1725_v19, %v1726_v46  ;;  %v1733_v30 = vadd.f32 %v1725_v19, %v1709_v45  ;;  %v1735_v47 = vadd.f32 %v1729_v51, %v1711_v36  ;;  %v1758_v32 = vadd.f32 0.0001, %v1755_v41 }
 0x10a   : > { %v1734_v1 = vadd.f32 %v1727_v23, %v1710_v11  ;;  %v1759_v61 = vadd.f32 0.0001, %v1756_v27  ;;  %v1762_v10 = vadd.f32 %v1604_v40, %v1470_v13  ;;  %v1742_v28 = vadd.f32 0.0001, %v1739_v17 }
 0x10b   : > { %v1736_v53 = vsub.f32 %v1733_v30, %v2702_v25  ;;  %v1738_v42 = vsub.f32 %v1735_v47, %v2856_v50  ;;  %v1744_v31 = vadd.f32 0.0001, %v1741_v5  ;;  %v1763_v6 = vadd.f32 0.0009, %v1760_v63 }
 0x10c   : > { %v1737_v34 = vsub.f32 %v1734_v1, %v2721_v44  ;;  %v1764_v12 = vadd.f32 0.0009, %v1761_v24  ;;  %v1765_v8 = vadd.f32 0.0009, %v1762_v10  ;;  %v1743_v25 = vadd.f32 0.0001, %v1740_v59 }
 0x10d   : > { %v1745_v56 = vmul.f32 2.0, %v1736_v53  ;;  %v1747_v54 = vmul.f32 2.0, %v1738_v42  ;;  %v1766_v50 = vmul.f32 %v1763_v6, %v1757_v35 }
 0x10e   : > { %v1746_v9 = vmul.f32 2.0, %v1737_v34  ;;  %v1767_v20 = vmul.f32 %v1764_v12, %v1758_v32  ;;  %v1768_v16 = vmul.f32 %v1765_v8, %v1759_v61 }
 0x10f   : > { %v1748_v22 = vadd.f32 0.0009, %v1745_v56  ;;  %v1750_v2 = vadd.f32 0.0009, %v1747_v54  ;;  %1992 = vrcp.f32 %v1766_v50 }
 0x110   : > { %v1749_v38 = vadd.f32 0.0009, %v1746_v9  ;;  %1994 = vrcp.f32 %v1767_v20 }
 0x111   : > { %v1751_v39 = vmul.f32 %v1748_v22, %v1742_v28  ;;  %v1753_v7 = vmul.f32 %v1750_v2, %v1744_v31  ;;  %1996 = vrcp.f32 %v1768_v16 }
 0x112   : > { %v1752_v44 = vmul.f32 %v1749_v38, %v1743_v25 }
 0x11c   : > { %v1993_v13 = vpop.eup %1992 }
 0x11d   : > { %v1995_v33 = vpop.eup %1994  ;;  %v1772_v37 = vmul.f32 %v1993_v13, %v1766_v50 }
 0x11e   : > { %v1997_v4 = vpop.eup %1996  ;;  %v1773_v0 = vmul.f32 %v1995_v33, %v1767_v20 }
 0x11f   : > { %v1774_v62 = vmul.f32 %v1997_v4, %v1768_v16  ;;  %v1775_v60 = vsub.f32 2.0, %v1772_v37 }
 0x120   : > { %v1776_v43 = vsub.f32 2.0, %v1773_v0 }
 0x121   : > { %v1777_v49 = vsub.f32 2.0, %v1774_v62  ;;  %v1778_v26 = vmul.f32 %v1993_v13, %v1775_v60 }
 0x122   : > { %v1779_v14 = vmul.f32 %v1995_v33, %v1776_v43 }
 0x123   : > { %v1780_v55 = vmul.f32 %v1997_v4, %v1777_v49  ;;  %v1781_v58 = vmul.f32 %v1778_v26, %v1751_v39 }
 0x124   : > { %v1782_v40 = vmul.f32 %v1779_v14, %v1752_v44 }
 0x125   : > { %v1783_v45 = vmul.f32 %v1780_v55, %v1753_v7  ;;  %v1787_v48 = vrot.slane %v1781_v58, 5 }
 0x126   : > { %v1788_v18 = vrot.slane %v1782_v40, 5 }
 0x127   : > { %v1790_v29 = vrot.slane %v1783_v45, 5 }
 0x128   : > { %v1789_v3 = vsel %vm395_vm4, %v1787_v48, %v1788_v18 }
 0x129   : > { %v1791_v15 = vsel %vm395_vm4, %v1788_v18, %v1790_v29  ;;  %v1794_v52 = vsel %vm1054_vm6, %v1789_v3, 0.0 }
 0x12a   : > { %v1795_v11 = vsel %vm1054_vm6, %v1791_v15, 0.0 }
 0x12b   : > { %v1796_v36 = vadd.f32 %v1795_v11, %v1794_v52 }
 0x12d   : > { %v1797_v46 = vrot.slane %v1796_v36, 4 }
 0x12f   : > { %v1798_v21 = vadd.f32 %v1797_v46, %v1796_v36 }
 0x131   : > { %v1799_v19 = vrot.slane %v1798_v21, 2 }
 0x133   : > { %v1800_v17 = vadd.f32 %v1799_v19, %v1798_v21 }
 0x135   : > { %v1801_v59 = vrot.slane %v1800_v17, 1 }
 0x137   : > { %v1802_v57 = vadd.f32 %v1801_v59, %v1800_v17 }
 0x139   : > { %1803 = vst.msk [vmem:[%s303_s8] sm:$0x1] %vm1064_vm7, %v1802_v57 }
 0x13a PF: > { %s15_s17 = sadd.s32 1, %s2020_s17   ;;  %s2974_s15 = smov %s2016_s16 }
 0x13b   : > { %p12_p5 = scmp.ge.s32.totalorder %s15_s17, 4   ;;  %s2975_s16 = smov %s2977_s18 }
 0x13d   :  { %14 = sbr.rel (!%p12_p5) target bundleno = 2 (0x2), region = 80 }

</bundles_post_ra>
